<compile_context>
chip_gen: v6e
topology: v6e:2x2x1
jax: 0.10.0
libtpu: 0.0.40
codegen_flags: <defaults>
</compile_context>

<pallas_src>
import functools

import jax
import jax.numpy as jnp
import numpy as np
from jax import lax
from jax.experimental import pallas as pl
from jax.experimental.pallas import tpu as pltpu


def _binder_partial_kernel(pae_ref, sc_ref, out_ref, sum_acc, cnt_acc, *,
                           chunk, n_chunks, row_tile, seq_len):
    """Reduce one (C, row_tile, L) pae block to a (C, 2) f32 slab.

    pae_ref : (C, row_tile, L) native dtype (lane dim = L)
    sc_ref  : (row_tile, L)    int32 same_chain
    out_ref : (C, 2) f32       col 0 = per-channel masked sum, col 1 = mask count
    sum_acc : (C, 1) f32 VMEM scratch ; cnt_acc : (1, 1) f32 VMEM scratch
    """
    n_ch = pae_ref.shape[0]
    sum_acc[...] = jnp.zeros_like(sum_acc)
    cnt_acc[...] = jnp.zeros_like(cnt_acc)

    # Global row index of the first row of this tile (handles L % row_tile != 0:
    # tail rows of a boundary block are masked out, never summed or counted).
    row0 = pl.program_id(1) * row_tile
    base_rows = row0 + lax.broadcasted_iota(jnp.int32, (chunk, 1), 0)   # (chunk, 1)

    @pl.loop(0, n_chunks)
    def _(i):
        r = pl.multiple_of(i * chunk, chunk)
        sc = sc_ref[pl.ds(r, chunk), :]                        # (chunk, L) int32
        valid = (base_rows + r) < seq_len                      # (chunk, 1) bool
        m = jnp.logical_and(sc == 0, valid)                    # (chunk, L) bool
        # f32 accumulation; per-chunk upcast keeps the f32 temporaries bounded
        # to C*chunk*L*4 bytes regardless of the (much larger) input tile.
        x = pae_ref[:, pl.ds(r, chunk), :].astype(jnp.float32)   # (C, chunk, L)
        xm = jnp.where(m[None, :, :], x, 0.0)                    # select, NaN-safe
        s_lane = jnp.sum(xm, axis=2)                              # (C, chunk)
        sum_acc[...] += jnp.sum(s_lane, axis=1, keepdims=True)    # (C, 1)
        cnt_acc[...] += jnp.sum(m.astype(jnp.float32), keepdims=True)   # (1, 1)

    out_ref[:, 0:1] = sum_acc[...]
    out_ref[:, 1:2] = jnp.broadcast_to(cnt_acc[...], (n_ch, 1))


def _sublane_granule(dtype):
    """Packed sublane granule for the input dtype: 8 (f32), 16 (bf16), 32 (8-bit)."""
    itemsize = jnp.dtype(dtype).itemsize
    return max(8, 32 // max(itemsize, 1))


def _scoped_vmem_limit_bytes():
    """64 MiB scoped on 128-MiB-VMEM chips (v5e/v6e), 32 MiB on v7x (64 MiB)."""
    phys = 128 * 1024 * 1024
    try:
        info = pltpu.get_tpu_info()
        v = getattr(info, "vmem_capacity_bytes", None)
        if v:
            phys = int(v)
    except Exception:
        pass
    return min(phys // 2, 64 * 1024 * 1024)


def _choose_row_tile(n_ch, seq_len, itemsize, granule, vmem_limit_bytes, batch):
    """Largest granule-aligned row tile whose double-buffered inputs plus the
    per-chunk f32 temporaries fit inside the scoped VMEM limit."""
    lane = seq_len
    chunk_temps = 3 * n_ch * granule * lane * 4       # upcast/select/bcast temps
    headroom = 2 * 1024 * 1024
    budget = vmem_limit_bytes - chunk_temps - headroom
    per_row = 2 * (n_ch * lane * itemsize + lane * 4)  # double-buffered pae + same_chain
    max_rows = budget // per_row if budget > 0 else granule
    row_tile = max(granule, (max_rows // granule) * granule)
    rows_ceil = -(-seq_len // granule) * granule
    row_tile = min(row_tile, rows_ceil)

    # v7x megacore: with a single batch, prefer an even row-tile count so both
    # TensorCores get equal work (harmless no-op on single-core v5e/v6e).
    if batch == 1:
        def n_tiles(t):
            return -(-seq_len // t)
        if n_tiles(row_tile) % 2 == 1 and row_tile > granule:
            cand = row_tile - granule
            floor_t = max(granule, row_tile // 2)
            while cand >= floor_t:
                if n_tiles(cand) % 2 == 0:
                    row_tile = cand
                    break
                cand -= granule
    return row_tile


def binder_network(pae, same_chain, weight, bias, *, row_tile=None):
    """pae: (B, n_bin_pae, L, L) float (NCHW, as in PyTorch); same_chain: (B, L, L)
    int/bool/float; weight: (1, n_bin_pae); bias: (1,).  Returns prob of shape (1,)."""
    B, C, L, L2 = pae.shape
    assert L == L2, "pae must be (B, C, L, L)"

    itemsize = jnp.dtype(pae.dtype).itemsize
    granule = _sublane_granule(pae.dtype)
    vmem_limit = _scoped_vmem_limit_bytes()
    if row_tile is None:
        row_tile = _choose_row_tile(C, L, itemsize, granule, vmem_limit, B)
    assert row_tile >= granule and row_tile % granule == 0, (
        f"row_tile must be a positive multiple of the sublane granule "
        f"({granule} for {pae.dtype})")

    n_row_tiles = pl.cdiv(L, row_tile)
    n_chunks = row_tile // granule

    # same_chain goes to the kernel as int32; the (== 0) compare runs in-kernel.
    if jnp.issubdtype(same_chain.dtype, jnp.floating):
        same_chain_i32 = (same_chain != 0).astype(jnp.int32)
    else:
        same_chain_i32 = same_chain.astype(jnp.int32)

    kernel = functools.partial(
        _binder_partial_kernel,
        chunk=granule, n_chunks=n_chunks, row_tile=row_tile, seq_len=L)

    partial_out = pl.pallas_call(
        kernel,
        out_shape=jax.ShapeDtypeStruct((B, n_row_tiles, C, 2), jnp.float32),
        grid=(B, n_row_tiles),
        in_specs=[
            # NCHW block: lane dim is L (full, lane-dense), sublane dim is row_tile.
            pl.BlockSpec((None, C, row_tile, L), lambda b, r: (b, 0, r, 0)),
            pl.BlockSpec((None, row_tile, L), lambda b, r: (b, r, 0)),
        ],
        out_specs=pl.BlockSpec((None, None, C, 2), lambda b, r: (b, r, 0, 0)),
        scratch_shapes=[
            pltpu.VMEM((C, 1), jnp.float32),
            pltpu.VMEM((1, 1), jnp.float32),
        ],
        compiler_params=pltpu.CompilerParams(
            dimension_semantics=("parallel", "parallel"),
            vmem_limit_bytes=vmem_limit,
        ),
    )(pae, same_chain_i32)

    # Tiny epilogue: combine per-tile partials, mean, Linear(C -> 1), sigmoid.
    sel_sum = jnp.sum(partial_out[..., 0], axis=(0, 1))        # (C,)
    cnt = jnp.sum(partial_out[:, :, 0, 1])
    # Empty selection -> torch mean is NaN, nan_to_num() -> 0.
    mean = jnp.where(cnt > 0.0, sel_sum / cnt, 0.0)
    w = weight.reshape(-1).astype(jnp.float32)                  # (C,)
    b = jnp.asarray(bias, jnp.float32).reshape(())
    logit = jnp.dot(mean, w) + b
    return jax.nn.sigmoid(logit).reshape(1)


def _reference(pae, same_chain, weight, bias):
    logits = jnp.transpose(pae.astype(jnp.float32), (0, 2, 3, 1))   # (B, L, L, C)
    m = (same_chain == 0).astype(jnp.float32)
    sel_sum = jnp.sum(logits * m[..., None], axis=(0, 1, 2))
    cnt = jnp.sum(m)
    mean = jnp.where(cnt > 0.0, sel_sum / cnt, 0.0)                 # nan_to_num
    logit = jnp.sum(mean * weight.reshape(-1).astype(jnp.float32)) \
        + jnp.asarray(bias, jnp.float32).reshape(())
    return jax.nn.sigmoid(logit).reshape(1)


if __name__ == "__main__":
    B, C, L = 2, 64, 32            # n_bin_pae = 64 (module default), small L
    key = jax.random.PRNGKey(0)
    k1, k2, k3, k4 = jax.random.split(key, 4)

    pae = jax.random.normal(k1, (B, C, L, L), dtype=jnp.float32)
    same_chain = jax.random.bernoulli(k2, 0.5, (B, L, L)).astype(jnp.int32)

    # The module's reset_parameter() zero-inits the Linear (prob would always be
    # 0.5); small random weights exercise the masked-mean data path instead.
    weight = 0.1 * jax.random.normal(k3, (1, C), dtype=jnp.float32)
    bias = 0.1 * jax.random.normal(k4, (1,), dtype=jnp.float32)

    # f32 path: explicit row_tile=16 -> grid (B, 2) with 2 in-kernel 8-row chunks.
    prob = binder_network(pae, same_chain, weight, bias, row_tile=16)
    jax.block_until_ready(prob)
    ref = _reference(pae, same_chain, weight, bias)
    assert prob.shape == (1,)
    assert np.allclose(np.asarray(prob), np.asarray(ref), atol=1e-5, rtol=1e-5), (prob, ref)

    # bf16 path: auto row tile (16-row packed granule), f32 accumulation in-kernel.
    pae_bf16 = pae.astype(jnp.bfloat16)
    prob_bf16 = binder_network(pae_bf16, same_chain, weight, bias)
    jax.block_until_ready(prob_bf16)
    ref_bf16 = _reference(pae_bf16, same_chain, weight, bias)
    assert np.allclose(np.asarray(prob_bf16), np.asarray(ref_bf16),
                       atol=1e-5, rtol=1e-5), (prob_bf16, ref_bf16)

    print("KERNEL_OK")
</pallas_src>

<mosaic_0001>
module attributes {stable_mosaic.version = 11 : i64} {
  func.func @_binder_partial_kernel(%arg0: i32, %arg1: i32, %arg2: memref<1x64x16x32xf32, #tpu.memory_space<vmem>>, %arg3: memref<1x16x32xi32, #tpu.memory_space<vmem>>, %arg4: memref<1x1x64x2xf32, #tpu.memory_space<vmem>>, %arg5: memref<64x1xf32, #tpu.memory_space<vmem>>, %arg6: memref<1x1xf32, #tpu.memory_space<vmem>>) attributes {dimension_semantics = [#tpu.dimension_semantics<parallel>, #tpu.dimension_semantics<parallel>], iteration_bounds = array<i64: 2, 2>, scalar_prefetch = 0 : i64, scratch_operands = 2 : i64, tpu.core_type = #tpu.core_type<tc>, window_params = [{transform_indices = @transform_0, window_bounds = array<i64: 1, 64, 16, 32>}, {transform_indices = @transform_1, window_bounds = array<i64: 1, 16, 32>}, {transform_indices = @transform_2, window_bounds = array<i64: 1, 1, 64, 2>}]} {
    %cst = arith.constant 0.000000e+00 : f32
    %0 = vector.broadcast %cst : f32 to vector<64x1xf32>
    %c0 = arith.constant 0 : index
    %c0_0 = arith.constant 0 : index
    %1 = vector.load %arg5[%c0, %c0_0] : memref<64x1xf32, #tpu.memory_space<vmem>>, vector<64x1xf32>
    tpu.vector_store %arg5[%c0, %c0_0], %0 {strides = array<i32>} : memref<64x1xf32, #tpu.memory_space<vmem>>, vector<64x1xf32>,
    %cst_1 = arith.constant 0.000000e+00 : f32
    %2 = vector.broadcast %cst_1 : f32 to vector<1x1xf32>
    %c0_2 = arith.constant 0 : index
    %c0_3 = arith.constant 0 : index
    %3 = vector.load %arg6[%c0_2, %c0_3] : memref<1x1xf32, #tpu.memory_space<vmem>>, vector<1x1xf32>
    tpu.vector_store %arg6[%c0_2, %c0_3], %2 {strides = array<i32>} : memref<1x1xf32, #tpu.memory_space<vmem>>, vector<1x1xf32>,
    %c16_i32 = arith.constant 16 : i32
    %4 = arith.muli %arg1, %c16_i32 : i32
    %5 = tpu.iota {dimensions = array<i32: 0>} : vector<8x1xi32>
    %6 = vector.broadcast %4 : i32 to vector<8x1xi32>
    %7 = arith.addi %6, %5 : vector<8x1xi32>
    %c0_i32 = arith.constant 0 : i32
    %c2_i32 = arith.constant 2 : i32
    %8 = arith.addi %c0_i32, %c2_i32 : i32
    %c1_i32 = arith.constant 1 : i32
    scf.for %arg7 = %c0_i32 to %8 step %c1_i32  : i32 {
      %c1_i32_16 = arith.constant 1 : i32
      %19 = arith.muli %arg7, %c1_i32_16 : i32
      %c0_i32_17 = arith.constant 0 : i32
      %20 = arith.addi %c0_i32_17, %19 : i32
      %c8_i32 = arith.constant 8 : i32
      %21 = arith.muli %20, %c8_i32 : i32
      %22 = tpu.assume_multiple %21, 8 : i32
      %c0_18 = arith.constant 0 : index
      %23 = arith.index_cast %22 : i32 to index
      %c0_19 = arith.constant 0 : index
      %24 = vector.load %arg3[%c0_18, %23, %c0_19] : memref<1x16x32xi32, #tpu.memory_space<vmem>>, vector<1x8x32xi32>
      %25 = vector.shape_cast %24 : vector<1x8x32xi32> to vector<8x32xi32>
      %26 = vector.broadcast %22 : i32 to vector<8x1xi32>
      %27 = arith.addi %7, %26 : vector<8x1xi32>
      %c32_i32 = arith.constant 32 : i32
      %28 = vector.broadcast %c32_i32 : i32 to vector<8x1xi32>
      %29 = arith.cmpi slt, %27, %28 : vector<8x1xi32>
      %c0_i32_20 = arith.constant 0 : i32
      %30 = vector.broadcast %c0_i32_20 : i32 to vector<8x32xi32>
      %31 = arith.cmpi eq, %25, %30 : vector<8x32xi32>
      %32 = vector.broadcast %29 : vector<8x1xi1> to vector<8x32xi1>
      %33 = arith.andi %31, %32 : vector<8x32xi1>
      %c0_21 = arith.constant 0 : index
      %c0_22 = arith.constant 0 : index
      %34 = arith.index_cast %22 : i32 to index
      %c0_23 = arith.constant 0 : index
      %35 = vector.load %arg2[%c0_21, %c0_22, %34, %c0_23] : memref<1x64x16x32xf32, #tpu.memory_space<vmem>>, vector<1x64x8x32xf32>
      %36 = vector.shape_cast %35 : vector<1x64x8x32xf32> to vector<64x8x32xf32>
      %37 = vector.shape_cast %33 : vector<8x32xi1> to vector<1x8x32xi1>
      %cst_24 = arith.constant 0.000000e+00 : f32
      %38 = vector.shape_cast %37 : vector<1x8x32xi1> to vector<1x8x32xi1>
      %39 = vector.broadcast %38 : vector<1x8x32xi1> to vector<64x8x32xi1>
      %40 = vector.broadcast %cst_24 : f32 to vector<64x8x32xf32>
      %41 = arith.select %39, %36, %40 : vector<64x8x32xi1>, vector<64x8x32xf32>
      %cst_25 = arith.constant dense<0.000000e+00> : vector<64x8xf32>
      %42 = vector.multi_reduction <add>, %41, %cst_25 [2] : vector<64x8x32xf32> to vector<64x8xf32>
      %c0_26 = arith.constant 0 : index
      %c0_27 = arith.constant 0 : index
      %43 = vector.load %arg5[%c0_26, %c0_27] : memref<64x1xf32, #tpu.memory_space<vmem>>, vector<64x1xf32>
      %cst_28 = arith.constant dense<0.000000e+00> : vector<64xf32>
      %44 = vector.multi_reduction <add>, %42, %cst_28 [1] : vector<64x8xf32> to vector<64xf32>
      %45 = vector.shape_cast %44 : vector<64xf32> to vector<64x1xf32>
      %46 = arith.addf %43, %45 : vector<64x1xf32>
      %c0_29 = arith.constant 0 : index
      %c0_30 = arith.constant 0 : index
      %47 = vector.load %arg5[%c0_29, %c0_30] : memref<64x1xf32, #tpu.memory_space<vmem>>, vector<64x1xf32>
      tpu.vector_store %arg5[%c0_29, %c0_30], %46 {strides = array<i32>} : memref<64x1xf32, #tpu.memory_space<vmem>>, vector<64x1xf32>,
      %c0_31 = arith.constant 0 : index
      %c0_32 = arith.constant 0 : index
      %48 = vector.load %arg6[%c0_31, %c0_32] : memref<1x1xf32, #tpu.memory_space<vmem>>, vector<1x1xf32>
      %49 = arith.extui %33 : vector<8x32xi1> to vector<8x32xi32>
      %50 = arith.sitofp %49 : vector<8x32xi32> to vector<8x32xf32>
      %51 = vector.shape_cast %50 : vector<8x32xf32> to vector<1x8x32xf32>
      %cst_33 = arith.constant dense<0.000000e+00> : vector<1xf32>
      %52 = vector.multi_reduction <add>, %51, %cst_33 [1, 2] : vector<1x8x32xf32> to vector<1xf32>
      %53 = vector.shape_cast %52 : vector<1xf32> to vector<1x1x1xf32>
      %54 = vector.extract %53[0, 0, 0] : f32 from vector<1x1x1xf32>
      %55 = vector.broadcast %54 : f32 to vector<1x1xf32>
      %56 = arith.addf %48, %55 : vector<1x1xf32>
      %c0_34 = arith.constant 0 : index
      %c0_35 = arith.constant 0 : index
      %57 = vector.load %arg6[%c0_34, %c0_35] : memref<1x1xf32, #tpu.memory_space<vmem>>, vector<1x1xf32>
      tpu.vector_store %arg6[%c0_34, %c0_35], %56 {strides = array<i32>} : memref<1x1xf32, #tpu.memory_space<vmem>>, vector<1x1xf32>,
    }
    %c2_i32_4 = arith.constant 2 : i32
    %c0_5 = arith.constant 0 : index
    %c0_6 = arith.constant 0 : index
    %9 = vector.load %arg5[%c0_5, %c0_6] : memref<64x1xf32, #tpu.memory_space<vmem>>, vector<64x1xf32>
    %c0_7 = arith.constant 0 : index
    %c0_8 = arith.constant 0 : index
    %c0_9 = arith.constant 0 : index
    %c0_10 = arith.constant 0 : index
    %10 = vector.load %arg4[%c0_7, %c0_8, %c0_9, %c0_10] : memref<1x1x64x2xf32, #tpu.memory_space<vmem>>, vector<1x1x64x1xf32>
    %11 = vector.shape_cast %10 : vector<1x1x64x1xf32> to vector<64x1xf32>
    %12 = vector.shape_cast %9 : vector<64x1xf32> to vector<1x1x64x1xf32>
    tpu.vector_store %arg4[%c0_7, %c0_8, %c0_9, %c0_10], %12 {strides = array<i32>} : memref<1x1x64x2xf32, #tpu.memory_space<vmem>>, vector<1x1x64x1xf32>,
    %c0_11 = arith.constant 0 : index
    %c0_12 = arith.constant 0 : index
    %13 = vector.load %arg6[%c0_11, %c0_12] : memref<1x1xf32, #tpu.memory_space<vmem>>, vector<1x1xf32>
    %14 = vector.shape_cast %13 : vector<1x1xf32> to vector<1x1xf32>
    %15 = vector.broadcast %14 : vector<1x1xf32> to vector<64x1xf32>
    %c0_13 = arith.constant 0 : index
    %c0_14 = arith.constant 0 : index
    %c0_15 = arith.constant 0 : index
    %c1 = arith.constant 1 : index
    %16 = vector.load %arg4[%c0_13, %c0_14, %c0_15, %c1] : memref<1x1x64x2xf32, #tpu.memory_space<vmem>>, vector<1x1x64x1xf32>
    %17 = vector.shape_cast %16 : vector<1x1x64x1xf32> to vector<64x1xf32>
    %18 = vector.shape_cast %15 : vector<64x1xf32> to vector<1x1x64x1xf32>
    tpu.vector_store %arg4[%c0_13, %c0_14, %c0_15, %c1], %18 {strides = array<i32>} : memref<1x1x64x2xf32, #tpu.memory_space<vmem>>, vector<1x1x64x1xf32>,
    return
  }
  func.func @transform_0(%arg0: i32, %arg1: i32) -> (i32, i32, i32, i32) {
    %c0_i32 = arith.constant 0 : i32
    %c0_i32_0 = arith.constant 0 : i32
    %c0_i32_1 = arith.constant 0 : i32
    return %arg0, %c0_i32, %arg1, %c0_i32_0 : i32, i32, i32, i32
  }
  func.func @transform_1(%arg0: i32, %arg1: i32) -> (i32, i32, i32) {
    %c0_i32 = arith.constant 0 : i32
    %c0_i32_0 = arith.constant 0 : i32
    return %arg0, %arg1, %c0_i32 : i32, i32, i32
  }
  func.func @transform_2(%arg0: i32, %arg1: i32) -> (i32, i32, i32, i32) {
    %c0_i32 = arith.constant 0 : i32
    %c0_i32_0 = arith.constant 0 : i32
    %c0_i32_1 = arith.constant 0 : i32
    return %arg0, %arg1, %c0_i32, %c0_i32_0 : i32, i32, i32, i32
  }
}

</mosaic_0001>

<bundles_post_ra>
// kernel: tpu_custom_call.1
= control target key start
LH: loop header
LB: loop body
LE: loop exit
PB: predicated region body
PF: predicated region fallthrough
CT: control target
= control target key end

     0   :  { %s1893_s9 = smov 0   ;;  %s1895_s10 = smov 0   ;;  %s2774_s0 = inlined_call_operand.vmem [shape: f32[2,64,32,32], index: 0, kind: input, shape index: {}]   ;;  %s2775_s1 = inlined_call_operand.vmem [shape: s32[2,32,32], index: 1, kind: input, shape index: {}]   ;;  %s2776_s2 = inlined_call_operand.vmem [shape: f32[2,2,64,2], index: 2, kind: output, shape index: {}]  }
   0x1   :  { %s1897_s11 = smov 0   ;;  %s1899_s12 = smov 0  }
   0x2   :  { %s1901_s13 = smov 0   ;;  %s1903_s14 = smov 0  }
   0x3   :  { %s1905_s15 = smov 0  }
   0x4 LB: > { %s21_s16 = sadd.s32 1, %s1861_s13  ;;  %s24_s17 = sadd.s32 1, %s1865_s14  ;;  %s1869_s15 = sphi %s1905_s15, %s12_s15   ;;  %s1865_s14 = sphi %s1903_s14, %s2784_s14   ;;  %s1861_s13 = sphi %s1901_s13, %s2783_s13   ;;  %s1857_s12 = sphi %s1899_s12, %s2782_s12   ;;  %s1853_s11 = sphi %s1897_s11, %s2781_s11   ;;  %s1849_s10 = sphi %s1895_s10, %s2780_s10   ;;  %s1845_s9 = sphi %s1893_s9, %s2779_s9  }
   0x5   : > { %p22_p0 = scmp.ge.s32.totalorder %s21_s16, 2  ;;  %p40_p1 = scmp.ne.s32.totalorder %s1849_s10, %s1845_s9 }
   0x6   : > { %p41_p2 = scmp.eq.s32.totalorder %s1869_s15, 0  ;;  %s33_s21 = sadd.s32 1, %s1849_s10 }
   0x7   : > { %s2786_s16 = smov (%p22_p0, %s21_s16), 0  ;;  %s2788_s17 = smov (!%p22_p0, %s24_s17), %s1865_s14 }
   0x8   : > { %p42_p3 = por %p41_p2, %p40_p1  ;;  %p26_p4 = scmp.ge.s32.totalorder %s2788_s17, 2 }
   0x9   : > { %s29_s18 = ssub.s32 %s1861_s13, %s2786_s16  ;;  %p1723_p6 = scmp.ge.s32.totalorder %s1869_s15, 4 }
   0xa   : > { %s2790_s17 = smov (%p26_p4, %s2788_s17), 0 }
   0xb   : > { %s28_s19 = ssub.s32 %s1865_s14, %s2790_s17  ;;  %122 = sbr.rel (%p1723_p6) target bundleno = 87 (0x57), region = 16 }
   0xc   : > { %s30_s20 = sor.u32 %s29_s18, %s28_s19 }
   0xd   : > { %p31_p5 = scmp.eq.s32.totalorder %s30_s20, 0 }
   0xf   : > { %s1944_s22 = scalar_select %p31_p5, %s1849_s10, %s33_s21  }
  0x10   : > { %125 = sbr.rel (!%p42_p3) target bundleno = 87 (0x57), region = 20  ;;  %s127_s23 = sand.u32 (%p42_p3), 1, %s1849_s10  }
  0x11   : > { %s1725_s24 = sshll.u32 (%p42_p3), %s1861_s13, 1  ;;  %s1724_s25 = sshll.u32 (%p42_p3), %s127_s23, 10 }
  0x12   : > { %s1726_s26 = sshll.u32 (%p42_p3), %s1865_s14, 8  ;;  %s1958_s4 = scalar_lea.vmem (%p42_p3), [#allocation4], %s1724_s25 }
  0x13   : > { %s132_s27 = sadd.s32 (%p42_p3), %s1726_s26, %s1725_s24 }
  0x14   : > { %s1727_s28 = sshll.u32 (%p42_p3), %s132_s27, 3 }
  0x15   : > { %s1953_s3 = scalar_lea.vmem %s2774_s0, %s1727_s28 }
  0x16   : > { %v417_v0 = vld [vmem:[%s1953_s3] sm:$0xff]  ;;  %v419_v1 = vld [vmem:[%s1953_s3 + $0x8] sm:$0xff] }
  0x17   : > { %v421_v2 = vld [vmem:[%s1953_s3 + $0x20] sm:$0xff]  ;;  %418 = vst [vmem:[%s1958_s4] sm:$0xff] %v417_v0  ;;  %420 = vst [vmem:[%s1958_s4 + $0x8] sm:$0xff] %v419_v1  ;;  %v423_v3 = vld [vmem:[%s1953_s3 + $0x28] sm:$0xff] }
  0x18   : > { %422 = vst [vmem:[%s1958_s4 + $0x10] sm:$0xff] %v421_v2  ;;  %v425_v4 = vld [vmem:[%s1953_s3 + $0x40] sm:$0xff]  ;;  %v427_v5 = vld [vmem:[%s1953_s3 + $0x48] sm:$0xff]  ;;  %424 = vst [vmem:[%s1958_s4 + $0x18] sm:$0xff] %v423_v3 }
  0x19   : > { %426 = vst [vmem:[%s1958_s4 + $0x20] sm:$0xff] %v425_v4  ;;  %428 = vst [vmem:[%s1958_s4 + $0x28] sm:$0xff] %v427_v5  ;;  %v429_v6 = vld [vmem:[%s1953_s3 + $0x60] sm:$0xff]  ;;  %v431_v7 = vld [vmem:[%s1953_s3 + $0x68] sm:$0xff] }
  0x1a   : > { %v433_v8 = vld [vmem:[%s1953_s3 + $0x80] sm:$0xff]  ;;  %430 = vst [vmem:[%s1958_s4 + $0x30] sm:$0xff] %v429_v6  ;;  %432 = vst [vmem:[%s1958_s4 + $0x38] sm:$0xff] %v431_v7  ;;  %v435_v9 = vld [vmem:[%s1953_s3 + $0x88] sm:$0xff] }
  0x1b   : > { %434 = vst [vmem:[%s1958_s4 + $0x40] sm:$0xff] %v433_v8  ;;  %v437_v10 = vld [vmem:[%s1953_s3 + $0xa0] sm:$0xff]  ;;  %v439_v11 = vld [vmem:[%s1953_s3 + $0xa8] sm:$0xff]  ;;  %436 = vst [vmem:[%s1958_s4 + $0x48] sm:$0xff] %v435_v9 }
  0x1c   : > { %438 = vst [vmem:[%s1958_s4 + $0x50] sm:$0xff] %v437_v10  ;;  %440 = vst [vmem:[%s1958_s4 + $0x58] sm:$0xff] %v439_v11  ;;  %v441_v12 = vld [vmem:[%s1953_s3 + $0xc0] sm:$0xff]  ;;  %v443_v13 = vld [vmem:[%s1953_s3 + $0xc8] sm:$0xff] }
  0x1d   : > { %v445_v14 = vld [vmem:[%s1953_s3 + $0xe0] sm:$0xff]  ;;  %442 = vst [vmem:[%s1958_s4 + $0x60] sm:$0xff] %v441_v12  ;;  %444 = vst [vmem:[%s1958_s4 + $0x68] sm:$0xff] %v443_v13  ;;  %v447_v15 = vld [vmem:[%s1953_s3 + $0xe8] sm:$0xff] }
  0x1e   : > { %446 = vst [vmem:[%s1958_s4 + $0x70] sm:$0xff] %v445_v14  ;;  %v449_v16 = vld [vmem:[%s1953_s3 + $0x100] sm:$0xff]  ;;  %v451_v17 = vld [vmem:[%s1953_s3 + $0x108] sm:$0xff]  ;;  %448 = vst [vmem:[%s1958_s4 + $0x78] sm:$0xff] %v447_v15 }
  0x1f   : > { %450 = vst [vmem:[%s1958_s4 + $0x80] sm:$0xff] %v449_v16  ;;  %452 = vst [vmem:[%s1958_s4 + $0x88] sm:$0xff] %v451_v17  ;;  %v453_v18 = vld [vmem:[%s1953_s3 + $0x120] sm:$0xff]  ;;  %v455_v19 = vld [vmem:[%s1953_s3 + $0x128] sm:$0xff] }
  0x20   : > { %v457_v20 = vld [vmem:[%s1953_s3 + $0x140] sm:$0xff]  ;;  %454 = vst [vmem:[%s1958_s4 + $0x90] sm:$0xff] %v453_v18  ;;  %456 = vst [vmem:[%s1958_s4 + $0x98] sm:$0xff] %v455_v19  ;;  %v459_v21 = vld [vmem:[%s1953_s3 + $0x148] sm:$0xff] }
  0x21   : > { %458 = vst [vmem:[%s1958_s4 + $0xa0] sm:$0xff] %v457_v20  ;;  %v461_v22 = vld [vmem:[%s1953_s3 + $0x160] sm:$0xff]  ;;  %v463_v23 = vld [vmem:[%s1953_s3 + $0x168] sm:$0xff]  ;;  %460 = vst [vmem:[%s1958_s4 + $0xa8] sm:$0xff] %v459_v21 }
  0x22   : > { %462 = vst [vmem:[%s1958_s4 + $0xb0] sm:$0xff] %v461_v22  ;;  %464 = vst [vmem:[%s1958_s4 + $0xb8] sm:$0xff] %v463_v23  ;;  %v465_v24 = vld [vmem:[%s1953_s3 + $0x180] sm:$0xff]  ;;  %v467_v25 = vld [vmem:[%s1953_s3 + $0x188] sm:$0xff] }
  0x23   : > { %v469_v26 = vld [vmem:[%s1953_s3 + $0x1a0] sm:$0xff]  ;;  %466 = vst [vmem:[%s1958_s4 + $0xc0] sm:$0xff] %v465_v24  ;;  %468 = vst [vmem:[%s1958_s4 + $0xc8] sm:$0xff] %v467_v25  ;;  %v471_v27 = vld [vmem:[%s1953_s3 + $0x1a8] sm:$0xff] }
  0x24   : > { %470 = vst [vmem:[%s1958_s4 + $0xd0] sm:$0xff] %v469_v26  ;;  %v473_v28 = vld [vmem:[%s1953_s3 + $0x1c0] sm:$0xff]  ;;  %v475_v29 = vld [vmem:[%s1953_s3 + $0x1c8] sm:$0xff]  ;;  %472 = vst [vmem:[%s1958_s4 + $0xd8] sm:$0xff] %v471_v27 }
  0x25   : > { %474 = vst [vmem:[%s1958_s4 + $0xe0] sm:$0xff] %v473_v28  ;;  %476 = vst [vmem:[%s1958_s4 + $0xe8] sm:$0xff] %v475_v29  ;;  %v477_v30 = vld [vmem:[%s1953_s3 + $0x1e0] sm:$0xff]  ;;  %v479_v31 = vld [vmem:[%s1953_s3 + $0x1e8] sm:$0xff] }
  0x26   : > { %v481_v32 = vld [vmem:[%s1953_s3 + $0x200] sm:$0xff]  ;;  %478 = vst [vmem:[%s1958_s4 + $0xf0] sm:$0xff] %v477_v30  ;;  %480 = vst [vmem:[%s1958_s4 + $0xf8] sm:$0xff] %v479_v31  ;;  %v483_v33 = vld [vmem:[%s1953_s3 + $0x208] sm:$0xff] }
  0x27   : > { %482 = vst [vmem:[%s1958_s4 + $0x100] sm:$0xff] %v481_v32  ;;  %v485_v34 = vld [vmem:[%s1953_s3 + $0x220] sm:$0xff]  ;;  %v487_v35 = vld [vmem:[%s1953_s3 + $0x228] sm:$0xff]  ;;  %484 = vst [vmem:[%s1958_s4 + $0x108] sm:$0xff] %v483_v33 }
  0x28   : > { %486 = vst [vmem:[%s1958_s4 + $0x110] sm:$0xff] %v485_v34  ;;  %488 = vst [vmem:[%s1958_s4 + $0x118] sm:$0xff] %v487_v35  ;;  %v489_v36 = vld [vmem:[%s1953_s3 + $0x240] sm:$0xff]  ;;  %v491_v37 = vld [vmem:[%s1953_s3 + $0x248] sm:$0xff] }
  0x29   : > { %v493_v38 = vld [vmem:[%s1953_s3 + $0x260] sm:$0xff]  ;;  %490 = vst [vmem:[%s1958_s4 + $0x120] sm:$0xff] %v489_v36  ;;  %492 = vst [vmem:[%s1958_s4 + $0x128] sm:$0xff] %v491_v37  ;;  %v495_v39 = vld [vmem:[%s1953_s3 + $0x268] sm:$0xff] }
  0x2a   : > { %494 = vst [vmem:[%s1958_s4 + $0x130] sm:$0xff] %v493_v38  ;;  %v497_v40 = vld [vmem:[%s1953_s3 + $0x280] sm:$0xff]  ;;  %v499_v41 = vld [vmem:[%s1953_s3 + $0x288] sm:$0xff]  ;;  %496 = vst [vmem:[%s1958_s4 + $0x138] sm:$0xff] %v495_v39 }
  0x2b   : > { %498 = vst [vmem:[%s1958_s4 + $0x140] sm:$0xff] %v497_v40  ;;  %500 = vst [vmem:[%s1958_s4 + $0x148] sm:$0xff] %v499_v41  ;;  %v501_v42 = vld [vmem:[%s1953_s3 + $0x2a0] sm:$0xff]  ;;  %v503_v43 = vld [vmem:[%s1953_s3 + $0x2a8] sm:$0xff] }
  0x2c   : > { %v505_v44 = vld [vmem:[%s1953_s3 + $0x2c0] sm:$0xff]  ;;  %502 = vst [vmem:[%s1958_s4 + $0x150] sm:$0xff] %v501_v42  ;;  %504 = vst [vmem:[%s1958_s4 + $0x158] sm:$0xff] %v503_v43  ;;  %v507_v45 = vld [vmem:[%s1953_s3 + $0x2c8] sm:$0xff] }
  0x2d   : > { %506 = vst [vmem:[%s1958_s4 + $0x160] sm:$0xff] %v505_v44  ;;  %v509_v46 = vld [vmem:[%s1953_s3 + $0x2e0] sm:$0xff]  ;;  %v511_v47 = vld [vmem:[%s1953_s3 + $0x2e8] sm:$0xff]  ;;  %508 = vst [vmem:[%s1958_s4 + $0x168] sm:$0xff] %v507_v45 }
  0x2e   : > { %510 = vst [vmem:[%s1958_s4 + $0x170] sm:$0xff] %v509_v46  ;;  %512 = vst [vmem:[%s1958_s4 + $0x178] sm:$0xff] %v511_v47  ;;  %v513_v48 = vld [vmem:[%s1953_s3 + $0x300] sm:$0xff]  ;;  %v515_v49 = vld [vmem:[%s1953_s3 + $0x308] sm:$0xff] }
  0x2f   : > { %v517_v50 = vld [vmem:[%s1953_s3 + $0x320] sm:$0xff]  ;;  %514 = vst [vmem:[%s1958_s4 + $0x180] sm:$0xff] %v513_v48  ;;  %516 = vst [vmem:[%s1958_s4 + $0x188] sm:$0xff] %v515_v49  ;;  %v519_v51 = vld [vmem:[%s1953_s3 + $0x328] sm:$0xff] }
  0x30   : > { %518 = vst [vmem:[%s1958_s4 + $0x190] sm:$0xff] %v517_v50  ;;  %v521_v52 = vld [vmem:[%s1953_s3 + $0x340] sm:$0xff]  ;;  %v523_v53 = vld [vmem:[%s1953_s3 + $0x348] sm:$0xff]  ;;  %520 = vst [vmem:[%s1958_s4 + $0x198] sm:$0xff] %v519_v51 }
  0x31   : > { %522 = vst [vmem:[%s1958_s4 + $0x1a0] sm:$0xff] %v521_v52  ;;  %524 = vst [vmem:[%s1958_s4 + $0x1a8] sm:$0xff] %v523_v53  ;;  %v525_v54 = vld [vmem:[%s1953_s3 + $0x360] sm:$0xff]  ;;  %v527_v55 = vld [vmem:[%s1953_s3 + $0x368] sm:$0xff] }
  0x32   : > { %v529_v56 = vld [vmem:[%s1953_s3 + $0x380] sm:$0xff]  ;;  %526 = vst [vmem:[%s1958_s4 + $0x1b0] sm:$0xff] %v525_v54  ;;  %528 = vst [vmem:[%s1958_s4 + $0x1b8] sm:$0xff] %v527_v55  ;;  %v531_v57 = vld [vmem:[%s1953_s3 + $0x388] sm:$0xff] }
  0x33   : > { %530 = vst [vmem:[%s1958_s4 + $0x1c0] sm:$0xff] %v529_v56  ;;  %v533_v58 = vld [vmem:[%s1953_s3 + $0x3a0] sm:$0xff]  ;;  %v535_v59 = vld [vmem:[%s1953_s3 + $0x3a8] sm:$0xff]  ;;  %532 = vst [vmem:[%s1958_s4 + $0x1c8] sm:$0xff] %v531_v57 }
  0x34   : > { %534 = vst [vmem:[%s1958_s4 + $0x1d0] sm:$0xff] %v533_v58  ;;  %536 = vst [vmem:[%s1958_s4 + $0x1d8] sm:$0xff] %v535_v59  ;;  %v537_v60 = vld [vmem:[%s1953_s3 + $0x3c0] sm:$0xff]  ;;  %v539_v61 = vld [vmem:[%s1953_s3 + $0x3c8] sm:$0xff] }
  0x35   : > { %v541_v62 = vld [vmem:[%s1953_s3 + $0x3e0] sm:$0xff]  ;;  %538 = vst [vmem:[%s1958_s4 + $0x1e0] sm:$0xff] %v537_v60  ;;  %540 = vst [vmem:[%s1958_s4 + $0x1e8] sm:$0xff] %v539_v61  ;;  %v543_v63 = vld [vmem:[%s1953_s3 + $0x3e8] sm:$0xff] }
  0x36   : > { %542 = vst [vmem:[%s1958_s4 + $0x1f0] sm:$0xff] %v541_v62  ;;  %v545_v0 = vld [vmem:[%s1953_s3 + $0x400] sm:$0xff]  ;;  %v547_v1 = vld [vmem:[%s1953_s3 + $0x408] sm:$0xff]  ;;  %544 = vst [vmem:[%s1958_s4 + $0x1f8] sm:$0xff] %v543_v63 }
  0x37   : > { %546 = vst [vmem:[%s1958_s4 + $0x200] sm:$0xff] %v545_v0  ;;  %548 = vst [vmem:[%s1958_s4 + $0x208] sm:$0xff] %v547_v1  ;;  %v549_v2 = vld [vmem:[%s1953_s3 + $0x420] sm:$0xff]  ;;  %v551_v3 = vld [vmem:[%s1953_s3 + $0x428] sm:$0xff] }
  0x38   : > { %v553_v4 = vld [vmem:[%s1953_s3 + $0x440] sm:$0xff]  ;;  %550 = vst [vmem:[%s1958_s4 + $0x210] sm:$0xff] %v549_v2  ;;  %552 = vst [vmem:[%s1958_s4 + $0x218] sm:$0xff] %v551_v3  ;;  %v555_v5 = vld [vmem:[%s1953_s3 + $0x448] sm:$0xff] }
  0x39   : > { %554 = vst [vmem:[%s1958_s4 + $0x220] sm:$0xff] %v553_v4  ;;  %v557_v6 = vld [vmem:[%s1953_s3 + $0x460] sm:$0xff]  ;;  %v559_v7 = vld [vmem:[%s1953_s3 + $0x468] sm:$0xff]  ;;  %556 = vst [vmem:[%s1958_s4 + $0x228] sm:$0xff] %v555_v5 }
  0x3a   : > { %558 = vst [vmem:[%s1958_s4 + $0x230] sm:$0xff] %v557_v6  ;;  %560 = vst [vmem:[%s1958_s4 + $0x238] sm:$0xff] %v559_v7  ;;  %v561_v8 = vld [vmem:[%s1953_s3 + $0x480] sm:$0xff]  ;;  %v563_v9 = vld [vmem:[%s1953_s3 + $0x488] sm:$0xff] }
  0x3b   : > { %v565_v10 = vld [vmem:[%s1953_s3 + $0x4a0] sm:$0xff]  ;;  %562 = vst [vmem:[%s1958_s4 + $0x240] sm:$0xff] %v561_v8  ;;  %564 = vst [vmem:[%s1958_s4 + $0x248] sm:$0xff] %v563_v9  ;;  %v567_v11 = vld [vmem:[%s1953_s3 + $0x4a8] sm:$0xff] }
  0x3c   : > { %566 = vst [vmem:[%s1958_s4 + $0x250] sm:$0xff] %v565_v10  ;;  %v569_v12 = vld [vmem:[%s1953_s3 + $0x4c0] sm:$0xff]  ;;  %v571_v13 = vld [vmem:[%s1953_s3 + $0x4c8] sm:$0xff]  ;;  %568 = vst [vmem:[%s1958_s4 + $0x258] sm:$0xff] %v567_v11 }
  0x3d   : > { %570 = vst [vmem:[%s1958_s4 + $0x260] sm:$0xff] %v569_v12  ;;  %572 = vst [vmem:[%s1958_s4 + $0x268] sm:$0xff] %v571_v13  ;;  %v573_v14 = vld [vmem:[%s1953_s3 + $0x4e0] sm:$0xff]  ;;  %v575_v15 = vld [vmem:[%s1953_s3 + $0x4e8] sm:$0xff] }
  0x3e   : > { %v577_v16 = vld [vmem:[%s1953_s3 + $0x500] sm:$0xff]  ;;  %574 = vst [vmem:[%s1958_s4 + $0x270] sm:$0xff] %v573_v14  ;;  %576 = vst [vmem:[%s1958_s4 + $0x278] sm:$0xff] %v575_v15  ;;  %v579_v17 = vld [vmem:[%s1953_s3 + $0x508] sm:$0xff] }
  0x3f   : > { %578 = vst [vmem:[%s1958_s4 + $0x280] sm:$0xff] %v577_v16  ;;  %v581_v18 = vld [vmem:[%s1953_s3 + $0x520] sm:$0xff]  ;;  %v583_v19 = vld [vmem:[%s1953_s3 + $0x528] sm:$0xff]  ;;  %580 = vst [vmem:[%s1958_s4 + $0x288] sm:$0xff] %v579_v17 }
  0x40   : > { %582 = vst [vmem:[%s1958_s4 + $0x290] sm:$0xff] %v581_v18  ;;  %584 = vst [vmem:[%s1958_s4 + $0x298] sm:$0xff] %v583_v19  ;;  %v585_v20 = vld [vmem:[%s1953_s3 + $0x540] sm:$0xff]  ;;  %v587_v21 = vld [vmem:[%s1953_s3 + $0x548] sm:$0xff] }
  0x41   : > { %v589_v22 = vld [vmem:[%s1953_s3 + $0x560] sm:$0xff]  ;;  %586 = vst [vmem:[%s1958_s4 + $0x2a0] sm:$0xff] %v585_v20  ;;  %588 = vst [vmem:[%s1958_s4 + $0x2a8] sm:$0xff] %v587_v21  ;;  %v591_v23 = vld [vmem:[%s1953_s3 + $0x568] sm:$0xff] }
  0x42   : > { %590 = vst [vmem:[%s1958_s4 + $0x2b0] sm:$0xff] %v589_v22  ;;  %v593_v24 = vld [vmem:[%s1953_s3 + $0x580] sm:$0xff]  ;;  %v595_v25 = vld [vmem:[%s1953_s3 + $0x588] sm:$0xff]  ;;  %592 = vst [vmem:[%s1958_s4 + $0x2b8] sm:$0xff] %v591_v23 }
  0x43   : > { %594 = vst [vmem:[%s1958_s4 + $0x2c0] sm:$0xff] %v593_v24  ;;  %596 = vst [vmem:[%s1958_s4 + $0x2c8] sm:$0xff] %v595_v25  ;;  %v597_v26 = vld [vmem:[%s1953_s3 + $0x5a0] sm:$0xff]  ;;  %v599_v27 = vld [vmem:[%s1953_s3 + $0x5a8] sm:$0xff] }
  0x44   : > { %v601_v28 = vld [vmem:[%s1953_s3 + $0x5c0] sm:$0xff]  ;;  %598 = vst [vmem:[%s1958_s4 + $0x2d0] sm:$0xff] %v597_v26  ;;  %600 = vst [vmem:[%s1958_s4 + $0x2d8] sm:$0xff] %v599_v27  ;;  %v603_v29 = vld [vmem:[%s1953_s3 + $0x5c8] sm:$0xff] }
  0x45   : > { %602 = vst [vmem:[%s1958_s4 + $0x2e0] sm:$0xff] %v601_v28  ;;  %v605_v30 = vld [vmem:[%s1953_s3 + $0x5e0] sm:$0xff]  ;;  %v607_v31 = vld [vmem:[%s1953_s3 + $0x5e8] sm:$0xff]  ;;  %604 = vst [vmem:[%s1958_s4 + $0x2e8] sm:$0xff] %v603_v29 }
  0x46   : > { %606 = vst [vmem:[%s1958_s4 + $0x2f0] sm:$0xff] %v605_v30  ;;  %608 = vst [vmem:[%s1958_s4 + $0x2f8] sm:$0xff] %v607_v31  ;;  %v609_v32 = vld [vmem:[%s1953_s3 + $0x600] sm:$0xff]  ;;  %v611_v33 = vld [vmem:[%s1953_s3 + $0x608] sm:$0xff] }
  0x47   : > { %v613_v34 = vld [vmem:[%s1953_s3 + $0x620] sm:$0xff]  ;;  %610 = vst [vmem:[%s1958_s4 + $0x300] sm:$0xff] %v609_v32  ;;  %612 = vst [vmem:[%s1958_s4 + $0x308] sm:$0xff] %v611_v33  ;;  %v615_v35 = vld [vmem:[%s1953_s3 + $0x628] sm:$0xff] }
  0x48   : > { %614 = vst [vmem:[%s1958_s4 + $0x310] sm:$0xff] %v613_v34  ;;  %v617_v36 = vld [vmem:[%s1953_s3 + $0x640] sm:$0xff]  ;;  %v619_v37 = vld [vmem:[%s1953_s3 + $0x648] sm:$0xff]  ;;  %616 = vst [vmem:[%s1958_s4 + $0x318] sm:$0xff] %v615_v35 }
  0x49   : > { %618 = vst [vmem:[%s1958_s4 + $0x320] sm:$0xff] %v617_v36  ;;  %620 = vst [vmem:[%s1958_s4 + $0x328] sm:$0xff] %v619_v37  ;;  %v621_v38 = vld [vmem:[%s1953_s3 + $0x660] sm:$0xff]  ;;  %v623_v39 = vld [vmem:[%s1953_s3 + $0x668] sm:$0xff] }
  0x4a   : > { %v625_v40 = vld [vmem:[%s1953_s3 + $0x680] sm:$0xff]  ;;  %622 = vst [vmem:[%s1958_s4 + $0x330] sm:$0xff] %v621_v38  ;;  %624 = vst [vmem:[%s1958_s4 + $0x338] sm:$0xff] %v623_v39  ;;  %v627_v41 = vld [vmem:[%s1953_s3 + $0x688] sm:$0xff] }
  0x4b   : > { %626 = vst [vmem:[%s1958_s4 + $0x340] sm:$0xff] %v625_v40  ;;  %v629_v42 = vld [vmem:[%s1953_s3 + $0x6a0] sm:$0xff]  ;;  %v631_v43 = vld [vmem:[%s1953_s3 + $0x6a8] sm:$0xff]  ;;  %628 = vst [vmem:[%s1958_s4 + $0x348] sm:$0xff] %v627_v41 }
  0x4c   : > { %630 = vst [vmem:[%s1958_s4 + $0x350] sm:$0xff] %v629_v42  ;;  %632 = vst [vmem:[%s1958_s4 + $0x358] sm:$0xff] %v631_v43  ;;  %v633_v44 = vld [vmem:[%s1953_s3 + $0x6c0] sm:$0xff]  ;;  %v635_v45 = vld [vmem:[%s1953_s3 + $0x6c8] sm:$0xff] }
  0x4d   : > { %v637_v46 = vld [vmem:[%s1953_s3 + $0x6e0] sm:$0xff]  ;;  %634 = vst [vmem:[%s1958_s4 + $0x360] sm:$0xff] %v633_v44  ;;  %636 = vst [vmem:[%s1958_s4 + $0x368] sm:$0xff] %v635_v45  ;;  %v639_v47 = vld [vmem:[%s1953_s3 + $0x6e8] sm:$0xff] }
  0x4e   : > { %638 = vst [vmem:[%s1958_s4 + $0x370] sm:$0xff] %v637_v46  ;;  %v641_v48 = vld [vmem:[%s1953_s3 + $0x700] sm:$0xff]  ;;  %v643_v49 = vld [vmem:[%s1953_s3 + $0x708] sm:$0xff]  ;;  %640 = vst [vmem:[%s1958_s4 + $0x378] sm:$0xff] %v639_v47 }
  0x4f   : > { %642 = vst [vmem:[%s1958_s4 + $0x380] sm:$0xff] %v641_v48  ;;  %644 = vst [vmem:[%s1958_s4 + $0x388] sm:$0xff] %v643_v49  ;;  %v645_v50 = vld [vmem:[%s1953_s3 + $0x720] sm:$0xff]  ;;  %v647_v51 = vld [vmem:[%s1953_s3 + $0x728] sm:$0xff] }
  0x50   : > { %v649_v52 = vld [vmem:[%s1953_s3 + $0x740] sm:$0xff]  ;;  %646 = vst [vmem:[%s1958_s4 + $0x390] sm:$0xff] %v645_v50  ;;  %648 = vst [vmem:[%s1958_s4 + $0x398] sm:$0xff] %v647_v51  ;;  %v651_v53 = vld [vmem:[%s1953_s3 + $0x748] sm:$0xff] }
  0x51   : > { %650 = vst [vmem:[%s1958_s4 + $0x3a0] sm:$0xff] %v649_v52  ;;  %v653_v54 = vld [vmem:[%s1953_s3 + $0x760] sm:$0xff]  ;;  %v655_v55 = vld [vmem:[%s1953_s3 + $0x768] sm:$0xff]  ;;  %652 = vst [vmem:[%s1958_s4 + $0x3a8] sm:$0xff] %v651_v53 }
  0x52   : > { %654 = vst [vmem:[%s1958_s4 + $0x3b0] sm:$0xff] %v653_v54  ;;  %656 = vst [vmem:[%s1958_s4 + $0x3b8] sm:$0xff] %v655_v55  ;;  %v657_v56 = vld [vmem:[%s1953_s3 + $0x780] sm:$0xff]  ;;  %v659_v57 = vld [vmem:[%s1953_s3 + $0x788] sm:$0xff] }
  0x53   : > { %v661_v58 = vld [vmem:[%s1953_s3 + $0x7a0] sm:$0xff]  ;;  %658 = vst [vmem:[%s1958_s4 + $0x3c0] sm:$0xff] %v657_v56  ;;  %660 = vst [vmem:[%s1958_s4 + $0x3c8] sm:$0xff] %v659_v57  ;;  %v663_v59 = vld [vmem:[%s1953_s3 + $0x7a8] sm:$0xff] }
  0x54   : > { %662 = vst [vmem:[%s1958_s4 + $0x3d0] sm:$0xff] %v661_v58  ;;  %v665_v60 = vld [vmem:[%s1953_s3 + $0x7c0] sm:$0xff]  ;;  %v667_v61 = vld [vmem:[%s1953_s3 + $0x7c8] sm:$0xff]  ;;  %664 = vst [vmem:[%s1958_s4 + $0x3d8] sm:$0xff] %v663_v59 }
  0x55   : > { %666 = vst [vmem:[%s1958_s4 + $0x3e0] sm:$0xff] %v665_v60  ;;  %668 = vst [vmem:[%s1958_s4 + $0x3e8] sm:$0xff] %v667_v61  ;;  %v669_v62 = vld [vmem:[%s1953_s3 + $0x7e0] sm:$0xff]  ;;  %v671_v63 = vld [vmem:[%s1953_s3 + $0x7e8] sm:$0xff] }
  0x56   : > { %670 = vst [vmem:[%s1958_s4 + $0x3f0] sm:$0xff] %v669_v62  ;;  %672 = vst [vmem:[%s1958_s4 + $0x3f8] sm:$0xff] %v671_v63 }
  0x57 PF: > { %p1728_p7 = scmp.ge.s32.totalorder %s1869_s15, 1  ;;  %p690_p8 = scmp.lt.s32.totalorder %s1869_s15, 5 }
  0x59   : > { %p691_p9 = pnand %p1728_p7, %p690_p8 }
  0x5a   : > { %s697_s5 = sand.u32 (!%p691_p9), 1, %s1845_s9   ;;  %s1730_s6 = sshll.u32 (!%p691_p9), %s1853_s11, 1 }
  0x5b   : > { %694 = sbr.rel (%p691_p9) target bundleno = 569 (0x239), region = 62  ;;  %s2217_s7 = sshll.u32 (!%p691_p9), %s697_s5, 10 }
  0x5c   : > { %p733_p10 = scmp.lt.s32.totalorder (!%p691_p9), %s1857_s12, 1  ;;  %p735_p11 = scmp.lt.s32.totalorder (!%p691_p9), %s1730_s6, 3 }
  0x5d   : > { %p744_p12 = scmp.lt.s32.totalorder (!%p691_p9), %s1853_s11, 1  ;;  %s1736_s19 = sshll.u32 (!%p691_p9), %s1853_s11, 4 }
  0x5e   : > { %s699_s3 = scalar_lea.vmem (!%p691_p9), [#allocation4], %s2217_s7  ;;  %s2250_s4 = smov (!%p691_p9), 0  }
  0x60   : > { %vm751_vm0 = vcmask 7168   ;;  %vm760_vm1 = vcmask 0   ;;  %v1875_v0 = vmov 0.0   ;;  %v763_v1 = vlaneseq  ;;  %s2792_s12 = smov (!%p733_p10, %s1857_s12), 1  ;;  %s2794_s6 = smov (!%p735_p11, %s1730_s6), 3 }
  0x61   : > { %752 = vst.msk [vmem:[#allocation2] sm:$0xff] %vm751_vm0, %v1875_v0  ;;  %753 = vst.msk [vmem:[#allocation2 + $0x8] sm:$0xff] %vm751_vm0, %v1875_v0  ;;  %s1731_s8 = sshll.u32 %s2792_s12, 2  ;;  %s1734_s24 = sshll.u32 %s2792_s12, 4  ;;  %v765_v3 = vstv %s1736_s19 }
  0x62   : > { %754 = vst.msk [vmem:[#allocation2 + $0x10] sm:$0xff] %vm751_vm0, %v1875_v0  ;;  %755 = vst.msk [vmem:[#allocation2 + $0x18] sm:$0xff] %vm751_vm0, %v1875_v0  ;;  %v2232_v2 = vshrl.u32 %v763_v1, 7  ;;  %s738_s9 = sadd.s32 %s1731_s8, %s2794_s6  ;;  %s2796_s11 = smov (!%p744_p12, %s1853_s11), 1 }
  0x63   : > { %756 = vst.msk [vmem:[#allocation2 + $0x20] sm:$0xff] %vm751_vm0, %v1875_v0  ;;  %757 = vst.msk [vmem:[#allocation2 + $0x28] sm:$0xff] %vm751_vm0, %v1875_v0  ;;  %s1732_s18 = sshll.u32 %s738_s9, 3  ;;  %s1733_s25 = sshll.u32 %s2796_s11, 3 }
  0x64   : > { %758 = vst.msk [vmem:[#allocation2 + $0x30] sm:$0xff] %vm751_vm0, %v1875_v0  ;;  %759 = vst.msk [vmem:[#allocation2 + $0x38] sm:$0xff] %vm751_vm0, %v1875_v0  ;;  %s2238_s23 = scalar_lea.vmem %s2775_s1, %s1732_s18  ;;  %v2242_v4 = vadd.s32 %v765_v3, %v2232_v2  ;;  %s748_s26 = sadd.s32 %s1734_s24, %s1733_s25 }
  0x65   : > { %761 = vst.msk [vmem:[#allocation3] sm:$0x1] %vm760_vm1, %v1875_v0  ;;  %s1735_s27 = sshll.u32 %s748_s26, 3 }
  0x66   : > { %s2247_s30 = scalar_lea.vmem %s2776_s2, %s1735_s27 }
  0x67 LB: >> { %s1737_s12 = sshll.u32 %s1873_s4, 3  ;;  %vm914_vm4 = vcmask 261120   ;;  %vm1437_vm6 = vcmask 1041409   ;;  %vm1439_vm7 = vcmask 1042434   ;;  %vm1441_vm8 = vcmask 1043459   ;;  %s772_s4 = sadd.s32 1, %s1873_s4   ;;  %s1873_s4 = sphi %s2250_s4, %s772_s4  }
  0x68   : >> { %s774_s11 = scalar_lea.vmem %s2238_s23, %s1737_s12  ;;  %v776_v5 = vstv %s1737_s12  ;;  %s2259_s5 = scalar_lea.vmem %s699_s3, %s1737_s12 [#allocation4]  ;;  %vm1443_vm9 = vcmask 1044484   ;;  %vm1445_vm10 = vcmask 1045509   ;;  %vm1447_vm11 = vcmask 1046534  }
  0x69   : >> { %v775_v6 = vld [vmem:[%s774_s11] sm:$0xff]  ;;  %v777_v7 = vadd.s32 %v776_v5, %v2242_v4  ;;  %v793_v10 = vld [vmem:[%s2259_s5 + $0x90] sm:$0xff]  ;;  %vm1449_vm12 = vcmask 1047559   ;;  %vm1508_vm13 = vcmask 64512   ;;  %p769_p13 = scmp.ge.s32.totalorder %s772_s4, 2  }
  0x6a   : >> { %v792_v8 = vld [vmem:[%s2259_s5 + $0x80] sm:$0xff]  ;;  %vm779_vm2 = vcmp.eq.s32.totalorder %v775_v6, 0  ;;  %v785_v11 = vld [vmem:[%s2259_s5 + $0x10] sm:$0xff]  ;;  %s1877_s8 = smov (%p769_p13), 1   ;;  %vm1589_vm14 = vcmask (%p769_p13), 15368  }
  0x6b   : >> { %v784_v9 = vld [vmem:[%s2259_s5] sm:$0xff]  ;;  %vm778_vm3 = vcmp.lt.s32.totalorder %v777_v7, 32  ;;  %v801_v19 = vld [vmem:[%s2259_s5 + $0x110] sm:$0xff] }
  0x6c   : >> { %vm2266_vm5 = vmand %vm779_vm2, %vm778_vm3  ;;  %v800_v20 = vld [vmem:[%s2259_s5 + $0x100] sm:$0xff]  ;;  %v809_v25 = vld [vmem:[%s2259_s5 + $0x190] sm:$0xff] }
  0x6d   : >> { %v858_v13 = vsel %vm2266_vm5, %v792_v8, 0.0  ;;  %v850_v14 = vsel %vm2266_vm5, %v784_v9, 0.0  ;;  %v859_v15 = vsel %vm2266_vm5, %v793_v10, 0.0  ;;  %v851_v16 = vsel %vm2266_vm5, %v785_v11, 0.0  ;;  %v808_v26 = vld [vmem:[%s2259_s5 + $0x180] sm:$0xff]  ;;  %v817_v31 = vld [vmem:[%s2259_s5 + $0x210] sm:$0xff] }
  0x6e   : >> { %v939_v17 = vsel %vm914_vm4, %v858_v13, 0.0  ;;  %v915_v18 = vsel %vm914_vm4, %v850_v14, 0.0  ;;  %v942_v21 = vsel %vm914_vm4, %v859_v15, 0.0  ;;  %v918_v22 = vsel %vm914_vm4, %v851_v16, 0.0  ;;  %v816_v32 = vld [vmem:[%s2259_s5 + $0x200] sm:$0xff]  ;;  %v825_v37 = vld [vmem:[%s2259_s5 + $0x290] sm:$0xff] }
  0x6f   : >> { %940 = vadd.xlane.f32.xlu1 %v939_v17  ;;  %916 = vadd.xlane.f32.xlu0 %v915_v18  ;;  %v867_v23 = vsel %vm2266_vm5, %v801_v19, 0.0  ;;  %v866_v24 = vsel %vm2266_vm5, %v800_v20, 0.0  ;;  %v875_v29 = vsel %vm2266_vm5, %v809_v25, 0.0  ;;  %v874_v30 = vsel %vm2266_vm5, %v808_v26, 0.0  ;;  %v824_v38 = vld [vmem:[%s2259_s5 + $0x280] sm:$0xff]  ;;  %v833_v43 = vld [vmem:[%s2259_s5 + $0x310] sm:$0xff] }
  0x70   : >> { %v966_v27 = vsel %vm914_vm4, %v867_v23, 0.0  ;;  %v963_v28 = vsel %vm914_vm4, %v866_v24, 0.0  ;;  %v990_v33 = vsel %vm914_vm4, %v875_v29, 0.0  ;;  %v987_v34 = vsel %vm914_vm4, %v874_v30, 0.0  ;;  %v832_v44 = vld [vmem:[%s2259_s5 + $0x300] sm:$0xff]  ;;  %v841_v49 = vld [vmem:[%s2259_s5 + $0x390] sm:$0xff] }
  0x71   : >> { %v883_v35 = vsel %vm2266_vm5, %v817_v31, 0.0  ;;  %v882_v36 = vsel %vm2266_vm5, %v816_v32, 0.0  ;;  %v891_v41 = vsel %vm2266_vm5, %v825_v37, 0.0  ;;  %v890_v42 = vsel %vm2266_vm5, %v824_v38, 0.0  ;;  %v840_v50 = vld [vmem:[%s2259_s5 + $0x380] sm:$0xff]  ;;  %v795_v19 = vld [vmem:[%s2259_s5 + $0xb0] sm:$0xff] }
  0x72   : >> { %v1014_v39 = vsel %vm914_vm4, %v883_v35, 0.0  ;;  %v1011_v40 = vsel %vm914_vm4, %v882_v36, 0.0  ;;  %v1038_v45 = vsel %vm914_vm4, %v891_v41, 0.0  ;;  %v1035_v46 = vsel %vm914_vm4, %v890_v42, 0.0  ;;  %v794_v55 = vld [vmem:[%s2259_s5 + $0xa0] sm:$0xff]  ;;  %v787_v20 = vld [vmem:[%s2259_s5 + $0x30] sm:$0xff] }
  0x73   : >> { %943 = vadd.xlane.f32.xlu1 %v942_v21  ;;  %919 = vadd.xlane.f32.xlu0 %v918_v22  ;;  %v899_v47 = vsel %vm2266_vm5, %v833_v43, 0.0  ;;  %v898_v48 = vsel %vm2266_vm5, %v832_v44, 0.0  ;;  %v907_v53 = vsel %vm2266_vm5, %v841_v49, 0.0  ;;  %v906_v54 = vsel %vm2266_vm5, %v840_v50, 0.0  ;;  %v786_v56 = vld [vmem:[%s2259_s5 + $0x20] sm:$0xff]  ;;  %v811_v25 = vld [vmem:[%s2259_s5 + $0x1b0] sm:$0xff] }
  0x74   : >> { %v1062_v51 = vsel %vm914_vm4, %v899_v47, 0.0  ;;  %v1059_v52 = vsel %vm914_vm4, %v898_v48, 0.0  ;;  %v1086_v57 = vsel %vm914_vm4, %v907_v53, 0.0  ;;  %v1083_v58 = vsel %vm914_vm4, %v906_v54, 0.0  ;;  %v810_v61 = vld [vmem:[%s2259_s5 + $0x1a0] sm:$0xff]  ;;  %v803_v26 = vld [vmem:[%s2259_s5 + $0x130] sm:$0xff] }
  0x75   : >> { %v860_v59 = vsel %vm2266_vm5, %v794_v55, 0.0  ;;  %v852_v60 = vsel %vm2266_vm5, %v786_v56, 0.0  ;;  %v802_v62 = vld [vmem:[%s2259_s5 + $0x120] sm:$0xff]  ;;  %v876_v3 = vsel %vm2266_vm5, %v810_v61, 0.0  ;;  %v861_v23 = vsel %vm2266_vm5, %v795_v19, 0.0  ;;  %v827_v31 = vld [vmem:[%s2259_s5 + $0x2b0] sm:$0xff] }
  0x76   : >> { %v945_v63 = vsel %vm914_vm4, %v860_v59, 0.0  ;;  %v921_v0 = vsel %vm914_vm4, %v852_v60, 0.0  ;;  %v868_v5 = vsel %vm2266_vm5, %v802_v62, 0.0  ;;  %v826_v6 = vld [vmem:[%s2259_s5 + $0x2a0] sm:$0xff]  ;;  %v993_v8 = vsel %vm914_vm4, %v876_v3, 0.0  ;;  %v819_v32 = vld [vmem:[%s2259_s5 + $0x230] sm:$0xff] }
  0x77   : >> { %967 = vadd.xlane.f32.xlu1 %v966_v27  ;;  %964 = vadd.xlane.f32.xlu0 %v963_v28  ;;  %v818_v7 = vld [vmem:[%s2259_s5 + $0x220] sm:$0xff]  ;;  %v969_v9 = vsel %vm914_vm4, %v868_v5, 0.0  ;;  %v892_v10 = vsel %vm2266_vm5, %v826_v6, 0.0  ;;  %v853_v24 = vsel %vm2266_vm5, %v787_v20, 0.0  ;;  %v948_v27 = vsel %vm914_vm4, %v861_v23, 0.0  ;;  %v843_v37 = vld [vmem:[%s2259_s5 + $0x3b0] sm:$0xff] }
  0x78   : >> { %v884_v11 = vsel %vm2266_vm5, %v818_v7, 0.0  ;;  %v842_v13 = vld [vmem:[%s2259_s5 + $0x3a0] sm:$0xff]  ;;  %v1041_v15 = vsel %vm914_vm4, %v892_v10, 0.0  ;;  %v924_v28 = vsel %vm914_vm4, %v853_v24, 0.0  ;;  %v877_v29 = vsel %vm2266_vm5, %v811_v25, 0.0  ;;  %v835_v38 = vld [vmem:[%s2259_s5 + $0x330] sm:$0xff] }
  0x79   : >> { %v834_v14 = vld [vmem:[%s2259_s5 + $0x320] sm:$0xff]  ;;  %v1017_v16 = vsel %vm914_vm4, %v884_v11, 0.0  ;;  %v908_v17 = vsel %vm2266_vm5, %v842_v13, 0.0  ;;  %v869_v30 = vsel %vm2266_vm5, %v803_v26, 0.0  ;;  %v893_v35 = vsel %vm2266_vm5, %v827_v31, 0.0  ;;  %v797_v6 = vld [vmem:[%s2259_s5 + $0xd0] sm:$0xff] }
  0x7a   : >> { %v900_v18 = vsel %vm2266_vm5, %v834_v14, 0.0  ;;  %v1089_v21 = vsel %vm914_vm4, %v908_v17, 0.0  ;;  %v885_v36 = vsel %vm2266_vm5, %v819_v32, 0.0  ;;  %v909_v41 = vsel %vm2266_vm5, %v843_v37, 0.0  ;;  %v796_v43 = vld [vmem:[%s2259_s5 + $0xc0] sm:$0xff]  ;;  %v789_v7 = vld [vmem:[%s2259_s5 + $0x50] sm:$0xff] }
  0x7b   : >> { %991 = vadd.xlane.f32.xlu1 %v990_v33  ;;  %988 = vadd.xlane.f32.xlu0 %v987_v34  ;;  %v1065_v22 = vsel %vm914_vm4, %v900_v18, 0.0  ;;  %v996_v33 = vsel %vm914_vm4, %v877_v29, 0.0  ;;  %v972_v34 = vsel %vm914_vm4, %v869_v30, 0.0  ;;  %v901_v42 = vsel %vm2266_vm5, %v835_v38, 0.0  ;;  %v788_v44 = vld [vmem:[%s2259_s5 + $0x40] sm:$0xff]  ;;  %v813_v13 = vld [vmem:[%s2259_s5 + $0x1d0] sm:$0xff] }
  0x7c   : >> { %v862_v47 = vsel %vm2266_vm5, %v796_v43, 0.0  ;;  %v854_v48 = vsel %vm2266_vm5, %v788_v44, 0.0  ;;  %v812_v49 = vld [vmem:[%s2259_s5 + $0x1c0] sm:$0xff]  ;;  %v863_v10 = vsel %vm2266_vm5, %v797_v6, 0.0  ;;  %v855_v11 = vsel %vm2266_vm5, %v789_v7, 0.0  ;;  %v805_v14 = vld [vmem:[%s2259_s5 + $0x150] sm:$0xff] }
  0x7d   : >> { %v804_v50 = vld [vmem:[%s2259_s5 + $0x140] sm:$0xff]  ;;  %v878_v53 = vsel %vm2266_vm5, %v812_v49, 0.0  ;;  %v879_v17 = vsel %vm2266_vm5, %v813_v13, 0.0  ;;  %v871_v18 = vsel %vm2266_vm5, %v805_v14, 0.0  ;;  %v829_v19 = vld [vmem:[%s2259_s5 + $0x2d0] sm:$0xff] }
  0x7e   : >> { %v870_v54 = vsel %vm2266_vm5, %v804_v50, 0.0  ;;  %v828_v55 = vld [vmem:[%s2259_s5 + $0x2c0] sm:$0xff]  ;;  %v821_v20 = vld [vmem:[%s2259_s5 + $0x250] sm:$0xff]  ;;  %v895_v23 = vsel %vm2266_vm5, %v829_v19, 0.0 }
  0x7f   : >> { %1015 = vadd.xlane.f32.xlu1 %v1014_v39  ;;  %1012 = vadd.xlane.f32.xlu0 %v1011_v40  ;;  %v1044_v39 = vsel %vm914_vm4, %v893_v35, 0.0  ;;  %v1020_v40 = vsel %vm914_vm4, %v885_v36, 0.0  ;;  %v820_v56 = vld [vmem:[%s2259_s5 + $0x240] sm:$0xff]  ;;  %v894_v59 = vsel %vm2266_vm5, %v828_v55, 0.0  ;;  %v887_v24 = vsel %vm2266_vm5, %v821_v20, 0.0  ;;  %v845_v25 = vld [vmem:[%s2259_s5 + $0x3d0] sm:$0xff] }
  0x80   : >> { %v886_v60 = vsel %vm2266_vm5, %v820_v56, 0.0  ;;  %v844_v61 = vld [vmem:[%s2259_s5 + $0x3c0] sm:$0xff]  ;;  %v837_v26 = vld [vmem:[%s2259_s5 + $0x350] sm:$0xff]  ;;  %v911_v29 = vsel %vm2266_vm5, %v845_v25, 0.0 }
  0x81   : >> { %v836_v62 = vld [vmem:[%s2259_s5 + $0x340] sm:$0xff]  ;;  %v910_v3 = vsel %vm2266_vm5, %v844_v61, 0.0  ;;  %v903_v30 = vsel %vm2266_vm5, %v837_v26, 0.0  ;;  %v799_v55 = vld [vmem:[%s2259_s5 + $0xf0] sm:$0xff] }
  0x82   : >> { %v902_v5 = vsel %vm2266_vm5, %v836_v62, 0.0  ;;  %v798_v31 = vld [vmem:[%s2259_s5 + $0xe0] sm:$0xff]  ;;  %v791_v56 = vld [vmem:[%s2259_s5 + $0x70] sm:$0xff] }
  0x83   : >> { %1039 = vadd.xlane.f32.xlu1 %v1038_v45  ;;  %1036 = vadd.xlane.f32.xlu0 %v1035_v46  ;;  %v1092_v45 = vsel %vm914_vm4, %v909_v41, 0.0  ;;  %v1068_v46 = vsel %vm914_vm4, %v901_v42, 0.0  ;;  %v790_v32 = vld [vmem:[%s2259_s5 + $0x60] sm:$0xff]  ;;  %v864_v35 = vsel %vm2266_vm5, %v798_v31, 0.0  ;;  %v815_v61 = vld [vmem:[%s2259_s5 + $0x1f0] sm:$0xff] }
  0x84   : >> { %v856_v36 = vsel %vm2266_vm5, %v790_v32, 0.0  ;;  %v814_v37 = vld [vmem:[%s2259_s5 + $0x1e0] sm:$0xff]  ;;  %v807_v62 = vld [vmem:[%s2259_s5 + $0x170] sm:$0xff] }
  0x85   : >> { %v806_v38 = vld [vmem:[%s2259_s5 + $0x160] sm:$0xff]  ;;  %v880_v41 = vsel %vm2266_vm5, %v814_v37, 0.0  ;;  %v831_v6 = vld [vmem:[%s2259_s5 + $0x2f0] sm:$0xff] }
  0x86   : >> { %v872_v42 = vsel %vm2266_vm5, %v806_v38, 0.0  ;;  %v830_v43 = vld [vmem:[%s2259_s5 + $0x2e0] sm:$0xff]  ;;  %v823_v7 = vld [vmem:[%s2259_s5 + $0x270] sm:$0xff] }
  0x87   : >> { %1063 = vadd.xlane.f32.xlu1 %v1062_v51  ;;  %1060 = vadd.xlane.f32.xlu0 %v1059_v52  ;;  %v951_v51 = vsel %vm914_vm4, %v862_v47, 0.0  ;;  %v927_v52 = vsel %vm914_vm4, %v854_v48, 0.0  ;;  %v822_v44 = vld [vmem:[%s2259_s5 + $0x260] sm:$0xff]  ;;  %v896_v47 = vsel %vm2266_vm5, %v830_v43, 0.0  ;;  %v847_v13 = vld [vmem:[%s2259_s5 + $0x3f0] sm:$0xff] }
  0x88   : >> { %v888_v48 = vsel %vm2266_vm5, %v822_v44, 0.0  ;;  %v846_v49 = vld [vmem:[%s2259_s5 + $0x3e0] sm:$0xff]  ;;  %v839_v14 = vld [vmem:[%s2259_s5 + $0x370] sm:$0xff] }
  0x89   : >> { %v838_v50 = vld [vmem:[%s2259_s5 + $0x360] sm:$0xff] }
  0x8b   : >> { %1087 = vadd.xlane.f32.xlu1 %v1086_v57  ;;  %1084 = vadd.xlane.f32.xlu0 %v1083_v58  ;;  %v999_v57 = vsel %vm914_vm4, %v878_v53, 0.0  ;;  %v975_v58 = vsel %vm914_vm4, %v870_v54, 0.0  ;;  %v912_v53 = vsel %vm2266_vm5, %v846_v49, 0.0  ;;  %v904_v54 = vsel %vm2266_vm5, %v838_v50, 0.0 }
  0x8f   : >> { %946 = vadd.xlane.f32.xlu1 %v945_v63  ;;  %922 = vadd.xlane.f32.xlu0 %v921_v0  ;;  %v1047_v63 = vsel %vm914_vm4, %v894_v59, 0.0  ;;  %v1023_v0 = vsel %vm914_vm4, %v886_v60, 0.0  ;;  %v865_v59 = vsel %vm2266_vm5, %v799_v55, 0.0  ;;  %v857_v60 = vsel %vm2266_vm5, %v791_v56, 0.0 }
  0x93   : >> { %994 = vadd.xlane.f32.xlu1 %v993_v8  ;;  %970 = vadd.xlane.f32.xlu0 %v969_v9  ;;  %v1095_v8 = vsel %vm914_vm4, %v910_v3, 0.0  ;;  %v1071_v9 = vsel %vm914_vm4, %v902_v5, 0.0  ;;  %v881_v3 = vsel %vm2266_vm5, %v815_v61, 0.0  ;;  %v873_v5 = vsel %vm2266_vm5, %v807_v62, 0.0 }
  0x97   : >> { %1042 = vadd.xlane.f32.xlu1 %v1041_v15  ;;  %1018 = vadd.xlane.f32.xlu0 %v1017_v16  ;;  %v954_v15 = vsel %vm914_vm4, %v863_v10, 0.0  ;;  %v930_v16 = vsel %vm914_vm4, %v855_v11, 0.0  ;;  %v897_v10 = vsel %vm2266_vm5, %v831_v6, 0.0  ;;  %v889_v11 = vsel %vm2266_vm5, %v823_v7, 0.0 }
  0x9b   : >> { %1090 = vadd.xlane.f32.xlu1 %v1089_v21  ;;  %1066 = vadd.xlane.f32.xlu0 %v1065_v22  ;;  %v1002_v21 = vsel %vm914_vm4, %v879_v17, 0.0  ;;  %v978_v22 = vsel %vm914_vm4, %v871_v18, 0.0  ;;  %v913_v17 = vsel %vm2266_vm5, %v847_v13, 0.0  ;;  %v905_v18 = vsel %vm2266_vm5, %v839_v14, 0.0 }
  0x9c   : >> { %v1104_v19 = vsel %vm914_vm4, %v913_v17, 0.0  ;;  %v1080_v20 = vsel %vm914_vm4, %v905_v18, 0.0 }
  0x9f   : >> { %949 = vadd.xlane.f32.xlu1 %v948_v27  ;;  %925 = vadd.xlane.f32.xlu0 %v924_v28  ;;  %v1050_v27 = vsel %vm914_vm4, %v895_v23, 0.0  ;;  %v1026_v28 = vsel %vm914_vm4, %v887_v24, 0.0  ;;  %v1180_v24 = vand.u32 127, %v763_v1 }
  0xa3   : >> { %997 = vadd.xlane.f32.xlu1 %v996_v33  ;;  %973 = vadd.xlane.f32.xlu0 %v972_v34  ;;  %v1098_v33 = vsel %vm914_vm4, %v911_v29, 0.0  ;;  %v1074_v34 = vsel %vm914_vm4, %v903_v30, 0.0 }
  0xa7   : >> { %1045 = vadd.xlane.f32.xlu1 %v1044_v39  ;;  %1021 = vadd.xlane.f32.xlu0 %v1020_v40  ;;  %v957_v39 = vsel %vm914_vm4, %v864_v35, 0.0  ;;  %v933_v40 = vsel %vm914_vm4, %v856_v36, 0.0 }
  0xab   : >> { %1093 = vadd.xlane.f32.xlu1 %v1092_v45  ;;  %1069 = vadd.xlane.f32.xlu0 %v1068_v46  ;;  %v1005_v45 = vsel %vm914_vm4, %v880_v41, 0.0  ;;  %v981_v46 = vsel %vm914_vm4, %v872_v42, 0.0 }
  0xaf   : >> { %952 = vadd.xlane.f32.xlu1 %v951_v51  ;;  %928 = vadd.xlane.f32.xlu0 %v927_v52  ;;  %v1053_v51 = vsel %vm914_vm4, %v896_v47, 0.0  ;;  %v1029_v52 = vsel %vm914_vm4, %v888_v48, 0.0 }
  0xb3   : >> { %1000 = vadd.xlane.f32.xlu1 %v999_v57  ;;  %976 = vadd.xlane.f32.xlu0 %v975_v58  ;;  %v1101_v57 = vsel %vm914_vm4, %v912_v53, 0.0  ;;  %v1077_v58 = vsel %vm914_vm4, %v904_v54, 0.0 }
  0xb7   : >> { %1048 = vadd.xlane.f32.xlu1 %v1047_v63  ;;  %1024 = vadd.xlane.f32.xlu0 %v1023_v0  ;;  %v960_v63 = vsel %vm914_vm4, %v865_v59, 0.0  ;;  %v936_v0 = vsel %vm914_vm4, %v857_v60, 0.0 }
  0xbb   : >> { %1096 = vadd.xlane.f32.xlu1 %v1095_v8  ;;  %1072 = vadd.xlane.f32.xlu0 %v1071_v9  ;;  %v1008_v8 = vsel %vm914_vm4, %v881_v3, 0.0  ;;  %v984_v9 = vsel %vm914_vm4, %v873_v5, 0.0 }
  0xbf   : >> { %955 = vadd.xlane.f32.xlu1 %v954_v15  ;;  %931 = vadd.xlane.f32.xlu0 %v930_v16  ;;  %v1056_v15 = vsel %vm914_vm4, %v897_v10, 0.0  ;;  %v1032_v16 = vsel %vm914_vm4, %v889_v11, 0.0 }
  0xc3   : >> { %1003 = vadd.xlane.f32.xlu1 %v1002_v21  ;;  %979 = vadd.xlane.f32.xlu0 %v978_v22  ;;  %v1876_v21 = vmov 0.0  }
  0xc4   : >> { %v1738_v22 = vsel %vm2266_vm5, 1.0, %v1876_v21 }
  0xc5   : >> { %v1551_v23 = vsel %vm914_vm4, %v1738_v22, 0.0 }
  0xc7   : >> { %1051 = vadd.xlane.f32.xlu1 %v1050_v27  ;;  %1027 = vadd.xlane.f32.xlu0 %v1026_v28  ;;  %v2527_v27 = vsub.s32 %v1180_v24, %v2232_v2 }
  0xcb   : >> { %1099 = vadd.xlane.f32.xlu1 %v1098_v33  ;;  %1075 = vadd.xlane.f32.xlu0 %v1074_v34 }
  0xcf   : >> { %958 = vadd.xlane.f32.xlu1 %v957_v39  ;;  %934 = vadd.xlane.f32.xlu0 %v933_v40 }
  0xd3   : >> { %1006 = vadd.xlane.f32.xlu1 %v1005_v45  ;;  %982 = vadd.xlane.f32.xlu0 %v981_v46 }
  0xd7   : >> { %1054 = vadd.xlane.f32.xlu1 %v1053_v51  ;;  %1030 = vadd.xlane.f32.xlu0 %v1029_v52 }
  0xdb   : >> { %1102 = vadd.xlane.f32.xlu1 %v1101_v57  ;;  %1078 = vadd.xlane.f32.xlu0 %v1077_v58 }
  0xdf   : >> { %961 = vadd.xlane.f32.xlu1 %v960_v63  ;;  %937 = vadd.xlane.f32.xlu0 %v936_v0 }
  0xe3   : >> { %1009 = vadd.xlane.f32.xlu1 %v1008_v8  ;;  %985 = vadd.xlane.f32.xlu0 %v984_v9 }
  0xe7   : >> { %1057 = vadd.xlane.f32.xlu1 %v1056_v15  ;;  %1033 = vadd.xlane.f32.xlu0 %v1032_v16 }
  0xeb   : >> { %1105 = vadd.xlane.f32.xlu1 %v1104_v19  ;;  %1081 = vadd.xlane.f32.xlu0 %v1080_v20 }
  0xef   : >> { %1552 = vadd.xlane.f32.xlu0 %v1551_v23 }
  0xf8   : >> { %v941_v25 = vpop.xlane.xlu1 %940  ;;  %v917_v26 = vpop.xlane.xlu0 %916 }
  0xf9   : >> { %v1216_v30 = vrot.slane %v941_v25, %v2527_v27  ;;  %v1184_v12 = vrot.slane %v917_v26, %v2527_v27 }
  0xfc   : >> { %v944_v28 = vpop.xlane.xlu1 %943  ;;  %v920_v29 = vpop.xlane.xlu0 %919 }
  0xfd   : >> { %v1220_v31 = vrot.slane %v944_v28, %v2527_v27  ;;  %v1188_v32 = vrot.slane %v920_v29, %v2527_v27 }
  0xff   : >> { %v1451_v33 = vsel %vm1437_vm6, %v1220_v31, %v1216_v30  ;;  %v1438_v34 = vsel %vm1437_vm6, %v1188_v32, %v1184_v12 }
 0x100   : >> { %v968_v35 = vpop.xlane.xlu1 %967  ;;  %v965_v36 = vpop.xlane.xlu0 %964 }
 0x101   : >> { %v1252_v37 = vrot.slane %v968_v35, %v2527_v27  ;;  %v1248_v38 = vrot.slane %v965_v36, %v2527_v27 }
 0x103   : >> { %v1458_v39 = vsel %vm1437_vm6, %v1252_v37, %v1248_v38 }
 0x104   : >> { %v992_v40 = vpop.xlane.xlu1 %991  ;;  %v989_v41 = vpop.xlane.xlu0 %988 }
 0x105   : >> { %v1284_v42 = vrot.slane %v992_v40, %v2527_v27  ;;  %v1280_v43 = vrot.slane %v989_v41, %v2527_v27 }
 0x107   : >> { %v1465_v44 = vsel %vm1437_vm6, %v1284_v42, %v1280_v43 }
 0x108   : >> { %v1016_v45 = vpop.xlane.xlu1 %1015  ;;  %v1013_v46 = vpop.xlane.xlu0 %1012 }
 0x109   : >> { %v1316_v47 = vrot.slane %v1016_v45, %v2527_v27  ;;  %v1312_v48 = vrot.slane %v1013_v46, %v2527_v27 }
 0x10b   : >> { %v1472_v49 = vsel %vm1437_vm6, %v1316_v47, %v1312_v48 }
 0x10c   : >> { %v1040_v50 = vpop.xlane.xlu1 %1039  ;;  %v1037_v51 = vpop.xlane.xlu0 %1036 }
 0x10d   : >> { %v1348_v52 = vrot.slane %v1040_v50, %v2527_v27  ;;  %v1344_v53 = vrot.slane %v1037_v51, %v2527_v27 }
 0x10f   : >> { %v1479_v54 = vsel %vm1437_vm6, %v1348_v52, %v1344_v53 }
 0x110   : >> { %v1064_v55 = vpop.xlane.xlu1 %1063  ;;  %v1061_v56 = vpop.xlane.xlu0 %1060 }
 0x111   : >> { %v1380_v57 = vrot.slane %v1064_v55, %v2527_v27  ;;  %v1376_v58 = vrot.slane %v1061_v56, %v2527_v27 }
 0x113   : >> { %v1486_v59 = vsel %vm1437_vm6, %v1380_v57, %v1376_v58 }
 0x114   : >> { %v1088_v60 = vpop.xlane.xlu1 %1087  ;;  %v1085_v61 = vpop.xlane.xlu0 %1084 }
 0x115   : >> { %v1412_v62 = vrot.slane %v1088_v60, %v2527_v27  ;;  %v1408_v63 = vrot.slane %v1085_v61, %v2527_v27 }
 0x117   : >> { %v1493_v0 = vsel %vm1437_vm6, %v1412_v62, %v1408_v63 }
 0x118   : >> { %v947_v3 = vpop.xlane.xlu1 %946  ;;  %v923_v5 = vpop.xlane.xlu0 %922 }
 0x119   : >> { %v1224_v6 = vrot.slane %v947_v3, %v2527_v27  ;;  %v1192_v7 = vrot.slane %v923_v5, %v2527_v27 }
 0x11b   : >> { %v1452_v8 = vsel %vm1439_vm7, %v1224_v6, %v1451_v33  ;;  %v1440_v9 = vsel %vm1439_vm7, %v1192_v7, %v1438_v34 }
 0x11c   : >> { %v995_v10 = vpop.xlane.xlu1 %994  ;;  %v971_v11 = vpop.xlane.xlu0 %970 }
 0x11d   : >> { %v1288_v13 = vrot.slane %v995_v10, %v2527_v27  ;;  %v1256_v14 = vrot.slane %v971_v11, %v2527_v27 }
 0x11f   : >> { %v2560_v15 = vsel %vm1439_vm7, %v1288_v13, %v1465_v44  ;;  %v2563_v16 = vsel %vm1439_vm7, %v1256_v14, %v1458_v39 }
 0x120   : >> { %v1043_v17 = vpop.xlane.xlu1 %1042  ;;  %v1019_v18 = vpop.xlane.xlu0 %1018 }
 0x121   : >> { %v1352_v19 = vrot.slane %v1043_v17, %v2527_v27  ;;  %v1320_v20 = vrot.slane %v1019_v18, %v2527_v27 }
 0x123   : >> { %v2568_v21 = vsel %vm1439_vm7, %v1352_v19, %v1479_v54  ;;  %v2571_v22 = vsel %vm1439_vm7, %v1320_v20, %v1472_v49 }
 0x124   : >> { %v1091_v23 = vpop.xlane.xlu1 %1090  ;;  %v1067_v24 = vpop.xlane.xlu0 %1066 }
 0x125   : >> { %v1416_v25 = vrot.slane %v1091_v23, %v2527_v27  ;;  %v1384_v26 = vrot.slane %v1067_v24, %v2527_v27 }
 0x127   : >> { %v1494_v28 = vsel %vm1439_vm7, %v1416_v25, %v1493_v0  ;;  %v2577_v29 = vsel %vm1439_vm7, %v1384_v26, %v1486_v59 }
 0x128   : >> { %v950_v30 = vpop.xlane.xlu1 %949  ;;  %v926_v12 = vpop.xlane.xlu0 %925 }
 0x129   : >> { %v1228_v57 = vrot.slane %v950_v30, %v2527_v27  ;;  %v1196_v58 = vrot.slane %v926_v12, %v2527_v27 }
 0x12b   : >> { %v1453_v3 = vsel %vm1441_vm8, %v1228_v57, %v1452_v8  ;;  %v1442_v5 = vsel %vm1441_vm8, %v1196_v58, %v1440_v9 }
 0x12c   : >> { %v998_v31 = vpop.xlane.xlu1 %997  ;;  %v974_v32 = vpop.xlane.xlu0 %973 }
 0x12d   : >> { %v1292_v59 = vrot.slane %v998_v31, %v2527_v27  ;;  %v1260_v62 = vrot.slane %v974_v32, %v2527_v27 }
 0x12f   : >> { %v1467_v14 = vsel %vm1441_vm8, %v1292_v59, %v2560_v15  ;;  %v1460_v20 = vsel %vm1441_vm8, %v1260_v62, %v2563_v16 }
 0x130   : >> { %v1046_v33 = vpop.xlane.xlu1 %1045  ;;  %v1022_v34 = vpop.xlane.xlu0 %1021 }
 0x131   : >> { %v1356_v63 = vrot.slane %v1046_v33, %v2527_v27  ;;  %v1324_v0 = vrot.slane %v1022_v34, %v2527_v27 }
 0x133   : >> { %v1481_v23 = vsel %vm1441_vm8, %v1356_v63, %v2568_v21  ;;  %v1474_v24 = vsel %vm1441_vm8, %v1324_v0, %v2571_v22 }
 0x134   : >> { %v1094_v35 = vpop.xlane.xlu1 %1093  ;;  %v2579_v36 = vpop.xlane.xlu0 %1069 }
 0x135   : >> { %v1420_v6 = vrot.slane %v1094_v35, %v2527_v27  ;;  %v1388_v26 = vrot.slane %v2579_v36, %v2527_v27 }
 0x137   : >> { %v1495_v25 = vsel %vm1441_vm8, %v1420_v6, %v1494_v28 }
 0x138   : >> { %v953_v37 = vpop.xlane.xlu1 %952  ;;  %v929_v38 = vpop.xlane.xlu0 %928 }
 0x139   : >> { %v1232_v7 = vrot.slane %v953_v37, %v2527_v27  ;;  %v1200_v10 = vrot.slane %v929_v38, %v2527_v27 }
 0x13b   : >> { %v1454_v31 = vsel %vm1443_vm9, %v1232_v7, %v1453_v3  ;;  %v1444_v16 = vsel %vm1443_vm9, %v1200_v10, %v1442_v5 }
 0x13c   : >> { %v1001_v39 = vpop.xlane.xlu1 %1000  ;;  %v977_v40 = vpop.xlane.xlu0 %976 }
 0x13d   : >> { %v1296_v11 = vrot.slane %v1001_v39, %v2527_v27  ;;  %v1264_v13 = vrot.slane %v977_v40, %v2527_v27 }
 0x13f   : >> { %v1468_v21 = vsel %vm1443_vm9, %v1296_v11, %v1467_v14  ;;  %v1461_v32 = vsel %vm1443_vm9, %v1264_v13, %v1460_v20 }
 0x140   : >> { %v1049_v41 = vpop.xlane.xlu1 %1048  ;;  %v1025_v42 = vpop.xlane.xlu0 %1024 }
 0x141   : >> { %v1360_v17 = vrot.slane %v1049_v41, %v2527_v27  ;;  %v1328_v8 = vrot.slane %v1025_v42, %v2527_v27 }
 0x143   : >> { %v1482_v22 = vsel %vm1443_vm9, %v1360_v17, %v1481_v23  ;;  %v1475_v33 = vsel %vm1443_vm9, %v1328_v8, %v1474_v24 }
 0x144   : >> { %v2581_v43 = vpop.xlane.xlu1 %1096  ;;  %v2583_v44 = vpop.xlane.xlu0 %1072 }
 0x145   : >> { %v1392_v6 = vrot.slane %v2583_v44, %v2527_v27 }
 0x148   : >> { %v956_v45 = vpop.xlane.xlu1 %955  ;;  %v932_v46 = vpop.xlane.xlu0 %931 }
 0x149   : >> { %v1236_v9 = vrot.slane %v956_v45, %v2527_v27  ;;  %v1204_v15 = vrot.slane %v932_v46, %v2527_v27 }
 0x14b   : >> { %v1455_v28 = vsel %vm1445_vm10, %v1236_v9, %v1454_v31  ;;  %v1446_v37 = vsel %vm1445_vm10, %v1204_v15, %v1444_v16 }
 0x14c   : >> { %v2585_v47 = vpop.xlane.xlu1 %1003  ;;  %v2587_v48 = vpop.xlane.xlu0 %979 }
 0x14d   : >> { %v1300_v34 = vrot.slane %v2585_v47, %v2527_v27  ;;  %v1268_v38 = vrot.slane %v2587_v48, %v2527_v27  ;;  %v1424_v47 = vrot.slane %v2581_v43, %v2527_v27 }
 0x14f   : >> { %v1469_v57 = vsel %vm1445_vm10, %v1300_v34, %v1468_v21  ;;  %v1462_v43 = vsel %vm1445_vm10, %v1268_v38, %v1461_v32 }
 0x150   : >> { %v2589_v49 = vpop.xlane.xlu1 %1051  ;;  %v2591_v50 = vpop.xlane.xlu0 %1027 }
 0x151   : >> { %v1364_v48 = vrot.slane %v2589_v49, %v2527_v27 }
 0x153   : >> { %v1483_v7 = vsel %vm1445_vm10, %v1364_v48, %v1482_v22 }
 0x154   : >> { %v2593_v51 = vpop.xlane.xlu1 %1099  ;;  %v2595_v52 = vpop.xlane.xlu0 %1075 }
 0x155   : >> { %v1396_v44 = vrot.slane %v2595_v52, %v2527_v27  ;;  %v1496_v52 = vsel %vm1443_vm9, %v1424_v47, %v1495_v25 }
 0x158   : >> { %v959_v53 = vpop.xlane.xlu1 %958  ;;  %v935_v54 = vpop.xlane.xlu0 %934 }
 0x159   : >> { %v1240_v30 = vrot.slane %v959_v53, %v2527_v27  ;;  %v1208_v12 = vrot.slane %v935_v54, %v2527_v27 }
 0x15b   : >> { %v1456_v45 = vsel %vm1447_vm11, %v1240_v30, %v1455_v28  ;;  %v1448_v46 = vsel %vm1447_vm11, %v1208_v12, %v1446_v37  ;;  %v1488_v30 = vsel %vm1441_vm8, %v1388_v26, %v2577_v29 }
 0x15c   : >> { %v2597_v55 = vpop.xlane.xlu1 %1006  ;;  %v2599_v56 = vpop.xlane.xlu0 %982  ;;  %v1489_v16 = vsel %vm1443_vm9, %v1392_v6, %v1488_v30 }
 0x15d   : >> { %v1304_v41 = vrot.slane %v2597_v55, %v2527_v27  ;;  %v1272_v42 = vrot.slane %v2599_v56, %v2527_v27  ;;  %v1332_v55 = vrot.slane %v2591_v50, %v2527_v27 }
 0x15f   : >> { %v1470_v3 = vsel %vm1447_vm11, %v1304_v41, %v1469_v57  ;;  %v1463_v5 = vsel %vm1447_vm11, %v1272_v42, %v1462_v43  ;;  %v1476_v13 = vsel %vm1445_vm10, %v1332_v55, %v1475_v33  ;;  %v1490_v33 = vsel %vm1445_vm10, %v1396_v44, %v1489_v16 }
 0x160   : >> { %v2604_v60 = vpop.xlane.xlu1 %1054  ;;  %v2606_v61 = vpop.xlane.xlu0 %1030 }
 0x161   : >> { %v1368_v0 = vrot.slane %v2604_v60, %v2527_v27  ;;  %v1336_v50 = vrot.slane %v2606_v61, %v2527_v27  ;;  %v1428_v60 = vrot.slane %v2593_v51, %v2527_v27 }
 0x163   : >> { %v1484_v24 = vsel %vm1447_vm11, %v1368_v0, %v1483_v7  ;;  %v1477_v15 = vsel %vm1447_vm11, %v1336_v50, %v1476_v13  ;;  %v1111_v50 = vld [vmem:[#allocation2 + $0x20] sm:$0xff]  ;;  %v1114_v13 = vld [vmem:[#allocation2 + $0x38] sm:$0xff] }
 0x164   : >> { %v2623_v18 = vpop.xlane.xlu1 %1102  ;;  %v2625_v19 = vpop.xlane.xlu0 %1078 }
 0x165   : >> { %v1432_v23 = vrot.slane %v2623_v18, %v2527_v27  ;;  %v1400_v51 = vrot.slane %v2625_v19, %v2527_v27  ;;  %v1497_v18 = vsel %vm1445_vm10, %v1428_v60, %v1496_v52 }
 0x167   : >> { %v1498_v26 = vsel %vm1447_vm11, %v1432_v23, %v1497_v18  ;;  %v1491_v28 = vsel %vm1447_vm11, %v1400_v51, %v1490_v33 }
 0x168   : >> { %v962_v35 = vpop.xlane.xlu1 %961  ;;  %v938_v36 = vpop.xlane.xlu0 %937 }
 0x169   : >> { %v1244_v39 = vrot.slane %v962_v35, %v2527_v27  ;;  %v1212_v40 = vrot.slane %v938_v36, %v2527_v27 }
 0x16b   : >> { %v1457_v53 = vsel %vm1449_vm12, %v1244_v39, %v1456_v45  ;;  %v1450_v54 = vsel %vm1449_vm12, %v1212_v40, %v1448_v46  ;;  %v1549_v46 = vld [vmem:[#allocation3] sm:$0x1] }
 0x16c   : >> { %v1010_v56 = vpop.xlane.xlu1 %1009  ;;  %v986_v58 = vpop.xlane.xlu0 %985  ;;  %v1512_v59 = vsel %vm1508_vm13, %v1457_v53, 0.0  ;;  %v1509_v62 = vsel %vm1508_vm13, %v1450_v54, 0.0  ;;  %v1107_v53 = vld [vmem:[#allocation2] sm:$0xff]  ;;  %v1108_v54 = vld [vmem:[#allocation2 + $0x8] sm:$0xff] }
 0x16d   : >> { %v1308_v63 = vrot.slane %v1010_v56, %v2527_v27  ;;  %v1276_v49 = vrot.slane %v986_v58, %v2527_v27  ;;  %1513 = vadd.xlane.f32.xlu0 %v1512_v59  ;;  %1510 = vadd.xlane.f32.xlu1 %v1509_v62  ;;  %v1109_v59 = vld [vmem:[#allocation2 + $0x10] sm:$0xff]  ;;  %v1110_v62 = vld [vmem:[#allocation2 + $0x18] sm:$0xff] }
 0x16f   : >> { %v1471_v10 = vsel %vm1449_vm12, %v1308_v63, %v1470_v3  ;;  %v1464_v11 = vsel %vm1449_vm12, %v1276_v49, %v1463_v5  ;;  %v1112_v3 = vld [vmem:[#allocation2 + $0x28] sm:$0xff] }
 0x170   : >> { %v1058_v14 = vpop.xlane.xlu1 %1057  ;;  %v1034_v61 = vpop.xlane.xlu0 %1033  ;;  %v1518_v17 = vsel %vm1508_vm13, %v1471_v10, 0.0  ;;  %v1515_v8 = vsel %vm1508_vm13, %v1464_v11, 0.0  ;;  %v1113_v11 = vld [vmem:[#allocation2 + $0x30] sm:$0xff] }
 0x171   : >> { %v1372_v9 = vrot.slane %v1058_v14, %v2527_v27  ;;  %v1340_v20 = vrot.slane %v1034_v61, %v2527_v27  ;;  %1519 = vadd.xlane.f32.xlu0 %v1518_v17  ;;  %1516 = vadd.xlane.f32.xlu1 %v1515_v8 }
 0x173   : >> { %v1485_v12 = vsel %vm1449_vm12, %v1372_v9, %v1484_v24  ;;  %v1478_v31 = vsel %vm1449_vm12, %v1340_v20, %v1477_v15 }
 0x174   : >> { %v1106_v21 = vpop.xlane.xlu1 %1105  ;;  %v1082_v32 = vpop.xlane.xlu0 %1081  ;;  %v1524_v19 = vsel %vm1508_vm13, %v1485_v12, 0.0  ;;  %v1521_v22 = vsel %vm1508_vm13, %v1478_v31, 0.0 }
 0x175   : >> { %v1436_v29 = vrot.slane %v1106_v21, %v2527_v27  ;;  %v1404_v25 = vrot.slane %v1082_v32, %v2527_v27  ;;  %1525 = vadd.xlane.f32.xlu0 %v1524_v19  ;;  %1522 = vadd.xlane.f32.xlu1 %v1521_v22 }
 0x177   : >> { %v1499_v34 = vsel %vm1449_vm12, %v1436_v29, %v1498_v26  ;;  %v1492_v35 = vsel %vm1449_vm12, %v1404_v25, %v1491_v28 }
 0x178   : >> { %v1530_v36 = vsel %vm1508_vm13, %v1499_v34, 0.0  ;;  %v1527_v37 = vsel %vm1508_vm13, %v1492_v35, 0.0  ;;  %v1553_v38 = vpop.xlane.xlu0 %1552 }
 0x179   : >> { %1531 = vadd.xlane.f32.xlu0 %v1530_v36  ;;  %1528 = vadd.xlane.f32.xlu1 %v1527_v37  ;;  %v1554_v39 = vrot.slane %v1553_v38, 4 }
 0x17b   : >> { %v1555_v40 = vadd.f32 %v1554_v39, %v1553_v38 }
 0x17d   : >> { %v1556_v27 = vrot.slane %v1555_v40, 2 }
 0x17f   : >> { %v1557_v41 = vadd.f32 %v1556_v27, %v1555_v40 }
 0x181   : >> { %v1558_v42 = vrot.slane %v1557_v41, 1 }
 0x183   : >> { %v1559_v45 = vadd.f32 %v1558_v42, %v1557_v41 }
 0x185   : >> { %1742 = vpush %v1559_v45 }
 0x1b6   : >> { %s1743_s6 = spop %1742 }
 0x1b7   : >> { %v1561_v47 = vstv %s1743_s6 }
 0x1b8   : >> { %v1562_v48 = vadd.f32 %v1561_v47, %v1549_v46 }
 0x1ba   : >> { %1563 = vst.msk [vmem:[#allocation3] sm:$0x1] %vm760_vm1, %v1562_v48 }
 0x1c1   : > { %v1739_v8 = vld [vmem:[#allocation3] ss:$0 sm:$0xff] (%p769_p13) }
 0x1c2   : > { %1586 = vrot.lane.b32.xlu0 (%p769_p13), %v1739_v8, %s1877_s8 }
 0x1f6   : >> { %v1511_v57 = vpop.xlane.xlu1 %1510  ;;  %v1514_v55 = vpop.xlane.xlu0 %1513 }
 0x1f7   : >> { %v1533_v56 = vadd.f32 %v1511_v57, %v1107_v53  ;;  %v1534_v58 = vadd.f32 %v1514_v55, %v1108_v54 }
 0x1f9   : >> { %1541 = vst.msk [vmem:[#allocation2] sm:$0xff] %vm751_vm0, %v1533_v56  ;;  %1542 = vst.msk [vmem:[#allocation2 + $0x8] sm:$0xff] %vm751_vm0, %v1534_v58 }
 0x1fa   : >> { %v1517_v43 = vpop.xlane.xlu1 %1516  ;;  %v1520_v63 = vpop.xlane.xlu0 %1519 }
 0x1fb   : >> { %v1535_v49 = vadd.f32 %v1517_v43, %v1109_v59  ;;  %v1536_v0 = vadd.f32 %v1520_v63, %v1110_v62 }
 0x1fd   : >> { %1543 = vst.msk [vmem:[#allocation2 + $0x10] sm:$0xff] %vm751_vm0, %v1535_v49  ;;  %1544 = vst.msk [vmem:[#allocation2 + $0x18] sm:$0xff] %vm751_vm0, %v1536_v0 }
 0x1fe   : >> { %v1523_v5 = vpop.xlane.xlu1 %1522  ;;  %v1526_v6 = vpop.xlane.xlu0 %1525 }
 0x1ff   : >> { %v1537_v7 = vadd.f32 %v1523_v5, %v1111_v50  ;;  %v1538_v10 = vadd.f32 %v1526_v6, %v1112_v3 }
 0x200   : > { %v1564_v44 = vld [vmem:[#allocation2] sm:$0xff] (%p769_p13)  ;;  %v1565_v9 = vld [vmem:[#allocation2 + $0x8] sm:$0xff] (%p769_p13) }
 0x201   : >> { %1545 = vst.msk [vmem:[#allocation2 + $0x20] sm:$0xff] %vm751_vm0, %v1537_v7  ;;  %1546 = vst.msk [vmem:[#allocation2 + $0x28] sm:$0xff] %vm751_vm0, %v1538_v10  ;;  %771 = sbr.rel (!%p769_p13) target bundleno = 103 (0x67), region = 113 }
 0x202   : >> { %v1529_v60 = vpop.xlane.xlu1 %1528  ;;  %v1532_v14 = vpop.xlane.xlu0 %1531  ;;  %1572 = vst.msk [vmem:[%s2247_s30] sm:$0xff] (%p769_p13), %vm751_vm0, %v1564_v44  ;;  %1573 = vst.msk [vmem:[%s2247_s30 + $0x8] sm:$0xff] (%p769_p13), %vm751_vm0, %v1565_v9 }
 0x203   : >> { %v1539_v61 = vadd.f32 %v1529_v60, %v1113_v11  ;;  %v1540_v17 = vadd.f32 %v1532_v14, %v1114_v13 }
 0x204   : > { %v1566_v20 = vld [vmem:[#allocation2 + $0x10] sm:$0xff] (%p769_p13)  ;;  %v1567_v23 = vld [vmem:[#allocation2 + $0x18] sm:$0xff] (%p769_p13) }
 0x205   : >> { %1547 = vst.msk [vmem:[#allocation2 + $0x30] sm:$0xff] %vm751_vm0, %v1539_v61  ;;  %1548 = vst.msk [vmem:[#allocation2 + $0x38] sm:$0xff] %vm751_vm0, %v1540_v17 }
 0x206   : > { %1574 = vst.msk [vmem:[%s2247_s30 + $0x10] sm:$0xff] %vm751_vm0, %v1566_v20  ;;  %1575 = vst.msk [vmem:[%s2247_s30 + $0x18] sm:$0xff] %vm751_vm0, %v1567_v23 }
 0x208   : > { %v1568_v51 = vld [vmem:[#allocation2 + $0x20] sm:$0xff]  ;;  %v1569_v1 = vld [vmem:[#allocation2 + $0x28] sm:$0xff] }
 0x209   : > { %1576 = vst.msk [vmem:[%s2247_s30 + $0x20] sm:$0xff] %vm751_vm0, %v1568_v51  ;;  %1577 = vst.msk [vmem:[%s2247_s30 + $0x28] sm:$0xff] %vm751_vm0, %v1569_v1 }
 0x20c   : > { %v1570_v2 = vld [vmem:[#allocation2 + $0x30] sm:$0xff]  ;;  %v1571_v4 = vld [vmem:[#allocation2 + $0x38] sm:$0xff] }
 0x20d   : > { %1578 = vst.msk [vmem:[%s2247_s30 + $0x30] sm:$0xff] %vm751_vm0, %v1570_v2  ;;  %1579 = vst.msk [vmem:[%s2247_s30 + $0x38] sm:$0xff] %vm751_vm0, %v1571_v4 }
 0x234   : > { %v1587_v24 = vpop.permute.xlu0 %1586 }
 0x235   : > { %1590 = vst.msk [vmem:[%s2247_s30] sm:$0xff] %vm1589_vm14, %v1587_v24  ;;  %1591 = vst.msk [vmem:[%s2247_s30 + $0x8] sm:$0xff] %vm1589_vm14, %v1587_v24 }
 0x236   : > { %1592 = vst.msk [vmem:[%s2247_s30 + $0x10] sm:$0xff] %vm1589_vm14, %v1587_v24  ;;  %1593 = vst.msk [vmem:[%s2247_s30 + $0x18] sm:$0xff] %vm1589_vm14, %v1587_v24 }
 0x237   : > { %1594 = vst.msk [vmem:[%s2247_s30 + $0x20] sm:$0xff] %vm1589_vm14, %v1587_v24  ;;  %1595 = vst.msk [vmem:[%s2247_s30 + $0x28] sm:$0xff] %vm1589_vm14, %v1587_v24 }
 0x238   : > { %1596 = vst.msk [vmem:[%s2247_s30 + $0x30] sm:$0xff] %vm1589_vm14, %v1587_v24  ;;  %1597 = vst.msk [vmem:[%s2247_s30 + $0x38] sm:$0xff] %vm1589_vm14, %v1587_v24 }
 0x239 PF: > { %s12_s15 = sadd.s32 1, %s1869_s15   ;;  %s2779_s9 = smov %s1849_s10 }
 0x23a   : > { %p9_p0 = scmp.ge.s32.totalorder %s12_s15, 6   ;;  %s2780_s10 = smov %s1944_s22 }
 0x23b   : > { %s2781_s11 = smov %s1861_s13  ;;  %s2782_s12 = smov %s1865_s14 }
 0x23c   : > { %s2783_s13 = smov %s2786_s16  ;;  %s2784_s14 = smov %s2790_s17 }
 0x23d   :  { %11 = sbr.rel (!%p9_p0) target bundleno = 4 (0x4), region = 124 }

</bundles_post_ra>
